<compile_context>
chip_gen: v5e
topology: v5e:2x2
jax: 0.10.0
libtpu: 0.0.40
codegen_flags: <defaults>
</compile_context>

<pallas_src>
import functools
import math

import jax
import jax.numpy as jnp
from jax.experimental import pallas as pl


# ----------------------------- Pallas kernel --------------------------------


def _fused_lstm_kernel(num_layers, seq_len, hidden, batch,
                       x_ref, w_ref, b_ref, hc0_ref, lin_w_ref, out_ref):
    """Operands (all VMEM-resident, one DMA each):
         x_ref     : (S*B, H)      bf16   time-major, zero-padded to K=H
         w_ref     : (2L, H, 4H)   bf16   [w_ih_t(l=0), w_hh_t(l=0), w_ih_t(l=1), ...]
         b_ref     : (L+1, 1, 4H)  f32    rows 0..L-1 = b_ih+b_hh, row L = padded linear bias
         hc0_ref   : (2L, B, H)    f32    rows 0..L-1 = h_0, rows L..2L-1 = c_0
         lin_w_ref : (H, 4H)       bf16   linear weight^T, zero-padded to 4H output lanes
         out_ref   : (B, 4H)       f32    lane-dense output (sliced to output_size outside)
    """
    H, B, S, L = hidden, batch, seq_len, num_layers

    layer_in = x_ref[...]                                   # (S*B, H) bf16

    outs = None
    for l in range(L):
        w_ih = w_ref[2 * l]                                 # (H, 4H) bf16
        w_hh = w_ref[2 * l + 1]                             # (H, 4H) bf16

        # Input projection + bias for ALL timesteps of this layer: one dense MXU pass,
        # nothing of it remains inside the serial recurrence below.
        x_proj = (jnp.dot(layer_in, w_ih, preferred_element_type=jnp.float32)
                  + b_ref[l])                               # (S*B, 4H) f32
        xp = [x_proj[t * B:(t + 1) * B, :] for t in range(S)]  # h-independent; hoistable

        h = hc0_ref[l].astype(jnp.bfloat16)                 # (B, H) bf16 (MXU operand)
        c = hc0_ref[L + l]                                  # (B, H) f32  (kept f32)

        outs = []
        for t in range(S):
            # Only the recurrent matmul + one add are on the critical path per step.
            gates = xp[t] + jnp.dot(h, w_hh, preferred_element_type=jnp.float32)  # (B,4H) f32
            sig = jax.nn.sigmoid(gates)                     # whole-tile EUP ops, f32
            tng = jnp.tanh(gates)
            i_g = sig[:, 0 * H:1 * H]
            f_g = sig[:, 1 * H:2 * H]
            g_g = tng[:, 2 * H:3 * H]
            o_g = sig[:, 3 * H:4 * H]
            c = f_g * c + i_g * g_g                         # f32 cell state
            h = (o_g * jnp.tanh(c)).astype(jnp.bfloat16)    # bf16 hidden (next MXU operand)
            outs.append(h)

        if l + 1 < L:
            # Next layer consumes the whole hidden sequence: stack once (time-major).
            layer_in = jnp.concatenate(outs, axis=0)        # (S*B, H) bf16

    # Linear head fused in (pred[:, -1, :] == linear(last hidden of top layer)).
    last_h = outs[-1]                                       # (B, H) bf16
    out_ref[...] = (jnp.dot(last_h, lin_w_ref[...], preferred_element_type=jnp.float32)
                    + b_ref[L])                             # (B, 4H) f32, lane-dense


# ------------------------------- wrapper -------------------------------------


def lstm_model_forward(output_size, params, input_seq, h_0, c_0):
    """input_seq: (batch, seq, input_size) batch-first -> pred: (batch, output_size)."""
    B, S, IN = input_seq.shape
    L, _, H = h_0.shape
    OUT_PAD = params["lin_w_pad"].shape[-1]

    # Time-major, flattened, zero-padded to K=H, single bf16 cast — all cheap XLA ops
    # off the kernel's serial path.
    x = jnp.transpose(input_seq, (1, 0, 2))
    x = jnp.pad(x, ((0, 0), (0, 0), (0, H - IN)))
    x = x.reshape(S * B, H).astype(jnp.bfloat16)

    hc0 = jnp.concatenate([h_0, c_0], axis=0)               # (2L, B, H) -> one DMA

    kernel = functools.partial(_fused_lstm_kernel, L, S, H, B)
    # Gridless call: every operand is brought into VMEM once (total working set < 100 KB)
    # and the whole model runs in a single launch.
    out = pl.pallas_call(
        kernel,
        out_shape=jax.ShapeDtypeStruct((B, OUT_PAD), jnp.float32),
    )(x, params["w_slab"], params["b_slab"], hc0, params["lin_w_pad"])
    return out[:, :output_size]


# --------------------------- reference (pure JAX) ----------------------------


def lstm_model_ref(output_size, params, input_seq, h_0, c_0):
    """Mirrors the kernel math (bf16 MXU operands, f32 accumulation/state)."""
    B, S, IN = input_seq.shape
    L, _, H = h_0.shape

    x = jnp.transpose(input_seq, (1, 0, 2))
    x = jnp.pad(x, ((0, 0), (0, 0), (0, H - IN))).astype(jnp.bfloat16)
    layer_in = x.reshape(S * B, H)

    outs = None
    for l in range(L):
        w_ih = params["w_slab"][2 * l]
        w_hh = params["w_slab"][2 * l + 1]
        xp = (jnp.dot(layer_in, w_ih, preferred_element_type=jnp.float32)
              + params["b_slab"][l])
        h = h_0[l].astype(jnp.bfloat16)
        c = c_0[l]
        outs = []
        for t in range(S):
            g = xp[t * B:(t + 1) * B, :] + jnp.dot(h, w_hh, preferred_element_type=jnp.float32)
            i = jax.nn.sigmoid(g[:, 0 * H:1 * H])
            f = jax.nn.sigmoid(g[:, 1 * H:2 * H])
            gg = jnp.tanh(g[:, 2 * H:3 * H])
            o = jax.nn.sigmoid(g[:, 3 * H:4 * H])
            c = f * c + i * gg
            h = (o * jnp.tanh(c)).astype(jnp.bfloat16)
            outs.append(h)
        layer_in = jnp.concatenate(outs, axis=0)

    last = outs[-1]
    out = (jnp.dot(last, params["lin_w_pad"], preferred_element_type=jnp.float32)
           + params["b_slab"][L])
    return out[:, :output_size]


# --------------------------------- main ---------------------------------------


if __name__ == "__main__":
    # model hyperparams consistent with the PyTorch module's forward
    input_size, hidden_size, num_layers, output_size, batch_size = 16, 32, 2, 4, 2
    seq_len = 8
    assert input_size <= hidden_size       # layer-0 W_ih is zero-padded to K = hidden_size
    assert output_size <= 4 * hidden_size  # linear output packed into the 4H-wide bias slab

    H = hidden_size
    OUT_PAD = 4 * H                        # lane-dense kernel output width (= 128 here)

    key = jax.random.PRNGKey(0)
    keys = iter(jax.random.split(key, 32))
    stdv = 1.0 / math.sqrt(hidden_size)

    def uni(k, shape):
        return jax.random.uniform(k, shape, jnp.float32, -stdv, stdv)

    w_rows, b_rows = [], []
    for l in range(num_layers):
        in_sz = input_size if l == 0 else hidden_size
        w_ih = uni(next(keys), (4 * H, in_sz))             # PyTorch weight_ih_l{l}
        w_hh = uni(next(keys), (4 * H, H))                 # PyTorch weight_hh_l{l}
        b_ih = uni(next(keys), (4 * H,))
        b_hh = uni(next(keys), (4 * H,))
        w_ih_t = jnp.pad(w_ih.T, ((0, H - in_sz), (0, 0)))  # (H, 4H), zero-padded K
        w_rows += [w_ih_t, w_hh.T]
        b_rows.append((b_ih + b_hh)[None, :])              # combined bias, f32

    lin_w = uni(next(keys), (output_size, H))              # PyTorch linear.weight
    lin_b = uni(next(keys), (output_size,))                # PyTorch linear.bias
    lin_w_pad = jnp.pad(lin_w.T, ((0, 0), (0, OUT_PAD - output_size)))
    b_rows.append(jnp.pad(lin_b, (0, OUT_PAD - output_size))[None, :])

    params = {
        "w_slab": jnp.stack(w_rows).astype(jnp.bfloat16),   # (2L, H, 4H) bf16 — one DMA
        "b_slab": jnp.stack(b_rows),                        # (L+1, 1, 4H) f32 — one DMA
        "lin_w_pad": lin_w_pad.astype(jnp.bfloat16),        # (H, 4H) bf16     — one DMA
    }

    # forward() draws random h_0 / c_0 each call; drawn deterministically here.
    h_0 = jax.random.normal(next(keys), (num_layers, batch_size, hidden_size), jnp.float32)
    c_0 = jax.random.normal(next(keys), (num_layers, batch_size, hidden_size), jnp.float32)
    input_seq = jax.random.normal(next(keys), (batch_size, seq_len, input_size), jnp.float32)

    fwd = jax.jit(functools.partial(lstm_model_forward, output_size))
    pred = jax.block_until_ready(fwd(params, input_seq, h_0, c_0))
    ref = lstm_model_ref(output_size, params, input_seq, h_0, c_0)

    assert pred.shape == (batch_size, output_size)
    # bf16 MXU operands => compared against the matching bf16 JAX reference at 1e-3.
    assert jnp.allclose(pred, ref, atol=1e-3, rtol=1e-3), \
        f"max abs err {float(jnp.max(jnp.abs(pred - ref)))}"
    print("KERNEL_OK")
</pallas_src>

<mosaic_0001>
module attributes {stable_mosaic.version = 11 : i64} {
  func.func @_fused_lstm_kernel(%arg0: memref<16x32xbf16, #tpu.memory_space<vmem>>, %arg1: memref<4x32x128xbf16, #tpu.memory_space<vmem>>, %arg2: memref<3x1x128xf32, #tpu.memory_space<vmem>>, %arg3: memref<4x2x32xf32, #tpu.memory_space<vmem>>, %arg4: memref<32x128xbf16, #tpu.memory_space<vmem>>, %arg5: memref<2x128xf32, #tpu.memory_space<vmem>>) attributes {dimension_semantics = [], scalar_prefetch = 0 : i64, scratch_operands = 0 : i64, tpu.core_type = #tpu.core_type<tc>} {
    %c0 = arith.constant 0 : index
    %c0_0 = arith.constant 0 : index
    %0 = vector.load %arg0[%c0, %c0_0] : memref<16x32xbf16, #tpu.memory_space<vmem>>, vector<16x32xbf16>
    %c0_1 = arith.constant 0 : index
    %c0_2 = arith.constant 0 : index
    %c0_3 = arith.constant 0 : index
    %1 = vector.load %arg1[%c0_1, %c0_2, %c0_3] : memref<4x32x128xbf16, #tpu.memory_space<vmem>>, vector<1x32x128xbf16>
    %2 = vector.shape_cast %1 : vector<1x32x128xbf16> to vector<32x128xbf16>
    %c1 = arith.constant 1 : index
    %c0_4 = arith.constant 0 : index
    %c0_5 = arith.constant 0 : index
    %3 = vector.load %arg1[%c1, %c0_4, %c0_5] : memref<4x32x128xbf16, #tpu.memory_space<vmem>>, vector<1x32x128xbf16>
    %4 = vector.shape_cast %3 : vector<1x32x128xbf16> to vector<32x128xbf16>
    %cst = arith.constant dense<0.000000e+00> : vector<16x128xf32>
    %5 = tpu.matmul %0, %2, %cst {dimension_numbers = #tpu.dot_dimension_numbers<[1], [0], [0], [1], [0, 0, 1, 1], [], []>} : vector<16x32xbf16>, vector<32x128xbf16>, vector<16x128xf32> -> vector<16x128xf32>
    %c0_6 = arith.constant 0 : index
    %c0_7 = arith.constant 0 : index
    %c0_8 = arith.constant 0 : index
    %6 = vector.load %arg2[%c0_6, %c0_7, %c0_8] : memref<3x1x128xf32, #tpu.memory_space<vmem>>, vector<1x1x128xf32>
    %7 = vector.shape_cast %6 : vector<1x1x128xf32> to vector<1x128xf32>
    %8 = vector.broadcast %7 : vector<1x128xf32> to vector<16x128xf32>
    %9 = arith.addf %5, %8 : vector<16x128xf32>
    %10 = vector.extract_strided_slice %9 {offsets = [0, 0], sizes = [2, 128], strides = [1, 1]} : vector<16x128xf32> to vector<2x128xf32>
    %11 = vector.extract_strided_slice %9 {offsets = [2, 0], sizes = [2, 128], strides = [1, 1]} : vector<16x128xf32> to vector<2x128xf32>
    %12 = vector.extract_strided_slice %9 {offsets = [4, 0], sizes = [2, 128], strides = [1, 1]} : vector<16x128xf32> to vector<2x128xf32>
    %13 = vector.extract_strided_slice %9 {offsets = [6, 0], sizes = [2, 128], strides = [1, 1]} : vector<16x128xf32> to vector<2x128xf32>
    %14 = vector.extract_strided_slice %9 {offsets = [8, 0], sizes = [2, 128], strides = [1, 1]} : vector<16x128xf32> to vector<2x128xf32>
    %15 = vector.extract_strided_slice %9 {offsets = [10, 0], sizes = [2, 128], strides = [1, 1]} : vector<16x128xf32> to vector<2x128xf32>
    %16 = vector.extract_strided_slice %9 {offsets = [12, 0], sizes = [2, 128], strides = [1, 1]} : vector<16x128xf32> to vector<2x128xf32>
    %17 = vector.extract_strided_slice %9 {offsets = [14, 0], sizes = [2, 128], strides = [1, 1]} : vector<16x128xf32> to vector<2x128xf32>
    %c0_9 = arith.constant 0 : index
    %c0_10 = arith.constant 0 : index
    %c0_11 = arith.constant 0 : index
    %18 = vector.load %arg3[%c0_9, %c0_10, %c0_11] : memref<4x2x32xf32, #tpu.memory_space<vmem>>, vector<1x2x32xf32>
    %19 = vector.shape_cast %18 : vector<1x2x32xf32> to vector<2x32xf32>
    %20 = arith.truncf %19 : vector<2x32xf32> to vector<2x32xbf16>
    %c2 = arith.constant 2 : index
    %c0_12 = arith.constant 0 : index
    %c0_13 = arith.constant 0 : index
    %21 = vector.load %arg3[%c2, %c0_12, %c0_13] : memref<4x2x32xf32, #tpu.memory_space<vmem>>, vector<1x2x32xf32>
    %22 = vector.shape_cast %21 : vector<1x2x32xf32> to vector<2x32xf32>
    %cst_14 = arith.constant dense<0.000000e+00> : vector<2x128xf32>
    %23 = tpu.matmul %20, %4, %cst_14 {dimension_numbers = #tpu.dot_dimension_numbers<[1], [0], [0], [1], [0, 0, 1, 1], [], []>} : vector<2x32xbf16>, vector<32x128xbf16>, vector<2x128xf32> -> vector<2x128xf32>
    %24 = arith.addf %10, %23 : vector<2x128xf32>
    %25 = arith.negf %24 : vector<2x128xf32>
    %26 = math.exp %25 : vector<2x128xf32>
    %cst_15 = arith.constant 1.000000e+00 : f32
    %27 = vector.broadcast %cst_15 : f32 to vector<2x128xf32>
    %28 = arith.addf %27, %26 : vector<2x128xf32>
    %29 = arith.divf %27, %28 : vector<2x128xf32>
    %30 = math.tanh %24 : vector<2x128xf32>
    %31 = vector.extract_strided_slice %29 {offsets = [0, 0], sizes = [2, 32], strides = [1, 1]} : vector<2x128xf32> to vector<2x32xf32>
    %32 = vector.extract_strided_slice %29 {offsets = [0, 32], sizes = [2, 32], strides = [1, 1]} : vector<2x128xf32> to vector<2x32xf32>
    %33 = vector.extract_strided_slice %30 {offsets = [0, 64], sizes = [2, 32], strides = [1, 1]} : vector<2x128xf32> to vector<2x32xf32>
    %34 = vector.extract_strided_slice %29 {offsets = [0, 96], sizes = [2, 32], strides = [1, 1]} : vector<2x128xf32> to vector<2x32xf32>
    %35 = arith.mulf %32, %22 : vector<2x32xf32>
    %36 = arith.mulf %31, %33 : vector<2x32xf32>
    %37 = arith.addf %35, %36 : vector<2x32xf32>
    %38 = math.tanh %37 : vector<2x32xf32>
    %39 = arith.mulf %34, %38 : vector<2x32xf32>
    %40 = arith.truncf %39 : vector<2x32xf32> to vector<2x32xbf16>
    %cst_16 = arith.constant dense<0.000000e+00> : vector<2x128xf32>
    %41 = tpu.matmul %40, %4, %cst_16 {dimension_numbers = #tpu.dot_dimension_numbers<[1], [0], [0], [1], [0, 0, 1, 1], [], []>} : vector<2x32xbf16>, vector<32x128xbf16>, vector<2x128xf32> -> vector<2x128xf32>
    %42 = arith.addf %11, %41 : vector<2x128xf32>
    %43 = arith.negf %42 : vector<2x128xf32>
    %44 = math.exp %43 : vector<2x128xf32>
    %cst_17 = arith.constant 1.000000e+00 : f32
    %45 = vector.broadcast %cst_17 : f32 to vector<2x128xf32>
    %46 = arith.addf %45, %44 : vector<2x128xf32>
    %47 = arith.divf %45, %46 : vector<2x128xf32>
    %48 = math.tanh %42 : vector<2x128xf32>
    %49 = vector.extract_strided_slice %47 {offsets = [0, 0], sizes = [2, 32], strides = [1, 1]} : vector<2x128xf32> to vector<2x32xf32>
    %50 = vector.extract_strided_slice %47 {offsets = [0, 32], sizes = [2, 32], strides = [1, 1]} : vector<2x128xf32> to vector<2x32xf32>
    %51 = vector.extract_strided_slice %48 {offsets = [0, 64], sizes = [2, 32], strides = [1, 1]} : vector<2x128xf32> to vector<2x32xf32>
    %52 = vector.extract_strided_slice %47 {offsets = [0, 96], sizes = [2, 32], strides = [1, 1]} : vector<2x128xf32> to vector<2x32xf32>
    %53 = arith.mulf %50, %37 : vector<2x32xf32>
    %54 = arith.mulf %49, %51 : vector<2x32xf32>
    %55 = arith.addf %53, %54 : vector<2x32xf32>
    %56 = math.tanh %55 : vector<2x32xf32>
    %57 = arith.mulf %52, %56 : vector<2x32xf32>
    %58 = arith.truncf %57 : vector<2x32xf32> to vector<2x32xbf16>
    %cst_18 = arith.constant dense<0.000000e+00> : vector<2x128xf32>
    %59 = tpu.matmul %58, %4, %cst_18 {dimension_numbers = #tpu.dot_dimension_numbers<[1], [0], [0], [1], [0, 0, 1, 1], [], []>} : vector<2x32xbf16>, vector<32x128xbf16>, vector<2x128xf32> -> vector<2x128xf32>
    %60 = arith.addf %12, %59 : vector<2x128xf32>
    %61 = arith.negf %60 : vector<2x128xf32>
    %62 = math.exp %61 : vector<2x128xf32>
    %cst_19 = arith.constant 1.000000e+00 : f32
    %63 = vector.broadcast %cst_19 : f32 to vector<2x128xf32>
    %64 = arith.addf %63, %62 : vector<2x128xf32>
    %65 = arith.divf %63, %64 : vector<2x128xf32>
    %66 = math.tanh %60 : vector<2x128xf32>
    %67 = vector.extract_strided_slice %65 {offsets = [0, 0], sizes = [2, 32], strides = [1, 1]} : vector<2x128xf32> to vector<2x32xf32>
    %68 = vector.extract_strided_slice %65 {offsets = [0, 32], sizes = [2, 32], strides = [1, 1]} : vector<2x128xf32> to vector<2x32xf32>
    %69 = vector.extract_strided_slice %66 {offsets = [0, 64], sizes = [2, 32], strides = [1, 1]} : vector<2x128xf32> to vector<2x32xf32>
    %70 = vector.extract_strided_slice %65 {offsets = [0, 96], sizes = [2, 32], strides = [1, 1]} : vector<2x128xf32> to vector<2x32xf32>
    %71 = arith.mulf %68, %55 : vector<2x32xf32>
    %72 = arith.mulf %67, %69 : vector<2x32xf32>
    %73 = arith.addf %71, %72 : vector<2x32xf32>
    %74 = math.tanh %73 : vector<2x32xf32>
    %75 = arith.mulf %70, %74 : vector<2x32xf32>
    %76 = arith.truncf %75 : vector<2x32xf32> to vector<2x32xbf16>
    %cst_20 = arith.constant dense<0.000000e+00> : vector<2x128xf32>
    %77 = tpu.matmul %76, %4, %cst_20 {dimension_numbers = #tpu.dot_dimension_numbers<[1], [0], [0], [1], [0, 0, 1, 1], [], []>} : vector<2x32xbf16>, vector<32x128xbf16>, vector<2x128xf32> -> vector<2x128xf32>
    %78 = arith.addf %13, %77 : vector<2x128xf32>
    %79 = arith.negf %78 : vector<2x128xf32>
    %80 = math.exp %79 : vector<2x128xf32>
    %cst_21 = arith.constant 1.000000e+00 : f32
    %81 = vector.broadcast %cst_21 : f32 to vector<2x128xf32>
    %82 = arith.addf %81, %80 : vector<2x128xf32>
    %83 = arith.divf %81, %82 : vector<2x128xf32>
    %84 = math.tanh %78 : vector<2x128xf32>
    %85 = vector.extract_strided_slice %83 {offsets = [0, 0], sizes = [2, 32], strides = [1, 1]} : vector<2x128xf32> to vector<2x32xf32>
    %86 = vector.extract_strided_slice %83 {offsets = [0, 32], sizes = [2, 32], strides = [1, 1]} : vector<2x128xf32> to vector<2x32xf32>
    %87 = vector.extract_strided_slice %84 {offsets = [0, 64], sizes = [2, 32], strides = [1, 1]} : vector<2x128xf32> to vector<2x32xf32>
    %88 = vector.extract_strided_slice %83 {offsets = [0, 96], sizes = [2, 32], strides = [1, 1]} : vector<2x128xf32> to vector<2x32xf32>
    %89 = arith.mulf %86, %73 : vector<2x32xf32>
    %90 = arith.mulf %85, %87 : vector<2x32xf32>
    %91 = arith.addf %89, %90 : vector<2x32xf32>
    %92 = math.tanh %91 : vector<2x32xf32>
    %93 = arith.mulf %88, %92 : vector<2x32xf32>
    %94 = arith.truncf %93 : vector<2x32xf32> to vector<2x32xbf16>
    %cst_22 = arith.constant dense<0.000000e+00> : vector<2x128xf32>
    %95 = tpu.matmul %94, %4, %cst_22 {dimension_numbers = #tpu.dot_dimension_numbers<[1], [0], [0], [1], [0, 0, 1, 1], [], []>} : vector<2x32xbf16>, vector<32x128xbf16>, vector<2x128xf32> -> vector<2x128xf32>
    %96 = arith.addf %14, %95 : vector<2x128xf32>
    %97 = arith.negf %96 : vector<2x128xf32>
    %98 = math.exp %97 : vector<2x128xf32>
    %cst_23 = arith.constant 1.000000e+00 : f32
    %99 = vector.broadcast %cst_23 : f32 to vector<2x128xf32>
    %100 = arith.addf %99, %98 : vector<2x128xf32>
    %101 = arith.divf %99, %100 : vector<2x128xf32>
    %102 = math.tanh %96 : vector<2x128xf32>
    %103 = vector.extract_strided_slice %101 {offsets = [0, 0], sizes = [2, 32], strides = [1, 1]} : vector<2x128xf32> to vector<2x32xf32>
    %104 = vector.extract_strided_slice %101 {offsets = [0, 32], sizes = [2, 32], strides = [1, 1]} : vector<2x128xf32> to vector<2x32xf32>
    %105 = vector.extract_strided_slice %102 {offsets = [0, 64], sizes = [2, 32], strides = [1, 1]} : vector<2x128xf32> to vector<2x32xf32>
    %106 = vector.extract_strided_slice %101 {offsets = [0, 96], sizes = [2, 32], strides = [1, 1]} : vector<2x128xf32> to vector<2x32xf32>
    %107 = arith.mulf %104, %91 : vector<2x32xf32>
    %108 = arith.mulf %103, %105 : vector<2x32xf32>
    %109 = arith.addf %107, %108 : vector<2x32xf32>
    %110 = math.tanh %109 : vector<2x32xf32>
    %111 = arith.mulf %106, %110 : vector<2x32xf32>
    %112 = arith.truncf %111 : vector<2x32xf32> to vector<2x32xbf16>
    %cst_24 = arith.constant dense<0.000000e+00> : vector<2x128xf32>
    %113 = tpu.matmul %112, %4, %cst_24 {dimension_numbers = #tpu.dot_dimension_numbers<[1], [0], [0], [1], [0, 0, 1, 1], [], []>} : vector<2x32xbf16>, vector<32x128xbf16>, vector<2x128xf32> -> vector<2x128xf32>
    %114 = arith.addf %15, %113 : vector<2x128xf32>
    %115 = arith.negf %114 : vector<2x128xf32>
    %116 = math.exp %115 : vector<2x128xf32>
    %cst_25 = arith.constant 1.000000e+00 : f32
    %117 = vector.broadcast %cst_25 : f32 to vector<2x128xf32>
    %118 = arith.addf %117, %116 : vector<2x128xf32>
    %119 = arith.divf %117, %118 : vector<2x128xf32>
    %120 = math.tanh %114 : vector<2x128xf32>
    %121 = vector.extract_strided_slice %119 {offsets = [0, 0], sizes = [2, 32], strides = [1, 1]} : vector<2x128xf32> to vector<2x32xf32>
    %122 = vector.extract_strided_slice %119 {offsets = [0, 32], sizes = [2, 32], strides = [1, 1]} : vector<2x128xf32> to vector<2x32xf32>
    %123 = vector.extract_strided_slice %120 {offsets = [0, 64], sizes = [2, 32], strides = [1, 1]} : vector<2x128xf32> to vector<2x32xf32>
    %124 = vector.extract_strided_slice %119 {offsets = [0, 96], sizes = [2, 32], strides = [1, 1]} : vector<2x128xf32> to vector<2x32xf32>
    %125 = arith.mulf %122, %109 : vector<2x32xf32>
    %126 = arith.mulf %121, %123 : vector<2x32xf32>
    %127 = arith.addf %125, %126 : vector<2x32xf32>
    %128 = math.tanh %127 : vector<2x32xf32>
    %129 = arith.mulf %124, %128 : vector<2x32xf32>
    %130 = arith.truncf %129 : vector<2x32xf32> to vector<2x32xbf16>
    %cst_26 = arith.constant dense<0.000000e+00> : vector<2x128xf32>
    %131 = tpu.matmul %130, %4, %cst_26 {dimension_numbers = #tpu.dot_dimension_numbers<[1], [0], [0], [1], [0, 0, 1, 1], [], []>} : vector<2x32xbf16>, vector<32x128xbf16>, vector<2x128xf32> -> vector<2x128xf32>
    %132 = arith.addf %16, %131 : vector<2x128xf32>
    %133 = arith.negf %132 : vector<2x128xf32>
    %134 = math.exp %133 : vector<2x128xf32>
    %cst_27 = arith.constant 1.000000e+00 : f32
    %135 = vector.broadcast %cst_27 : f32 to vector<2x128xf32>
    %136 = arith.addf %135, %134 : vector<2x128xf32>
    %137 = arith.divf %135, %136 : vector<2x128xf32>
    %138 = math.tanh %132 : vector<2x128xf32>
    %139 = vector.extract_strided_slice %137 {offsets = [0, 0], sizes = [2, 32], strides = [1, 1]} : vector<2x128xf32> to vector<2x32xf32>
    %140 = vector.extract_strided_slice %137 {offsets = [0, 32], sizes = [2, 32], strides = [1, 1]} : vector<2x128xf32> to vector<2x32xf32>
    %141 = vector.extract_strided_slice %138 {offsets = [0, 64], sizes = [2, 32], strides = [1, 1]} : vector<2x128xf32> to vector<2x32xf32>
    %142 = vector.extract_strided_slice %137 {offsets = [0, 96], sizes = [2, 32], strides = [1, 1]} : vector<2x128xf32> to vector<2x32xf32>
    %143 = arith.mulf %140, %127 : vector<2x32xf32>
    %144 = arith.mulf %139, %141 : vector<2x32xf32>
    %145 = arith.addf %143, %144 : vector<2x32xf32>
    %146 = math.tanh %145 : vector<2x32xf32>
    %147 = arith.mulf %142, %146 : vector<2x32xf32>
    %148 = arith.truncf %147 : vector<2x32xf32> to vector<2x32xbf16>
    %cst_28 = arith.constant dense<0.000000e+00> : vector<2x128xf32>
    %149 = tpu.matmul %148, %4, %cst_28 {dimension_numbers = #tpu.dot_dimension_numbers<[1], [0], [0], [1], [0, 0, 1, 1], [], []>} : vector<2x32xbf16>, vector<32x128xbf16>, vector<2x128xf32> -> vector<2x128xf32>
    %150 = arith.addf %17, %149 : vector<2x128xf32>
    %151 = arith.negf %150 : vector<2x128xf32>
    %152 = math.exp %151 : vector<2x128xf32>
    %cst_29 = arith.constant 1.000000e+00 : f32
    %153 = vector.broadcast %cst_29 : f32 to vector<2x128xf32>
    %154 = arith.addf %153, %152 : vector<2x128xf32>
    %155 = arith.divf %153, %154 : vector<2x128xf32>
    %156 = math.tanh %150 : vector<2x128xf32>
    %157 = vector.extract_strided_slice %155 {offsets = [0, 0], sizes = [2, 32], strides = [1, 1]} : vector<2x128xf32> to vector<2x32xf32>
    %158 = vector.extract_strided_slice %155 {offsets = [0, 32], sizes = [2, 32], strides = [1, 1]} : vector<2x128xf32> to vector<2x32xf32>
    %159 = vector.extract_strided_slice %156 {offsets = [0, 64], sizes = [2, 32], strides = [1, 1]} : vector<2x128xf32> to vector<2x32xf32>
    %160 = vector.extract_strided_slice %155 {offsets = [0, 96], sizes = [2, 32], strides = [1, 1]} : vector<2x128xf32> to vector<2x32xf32>
    %161 = arith.mulf %158, %145 : vector<2x32xf32>
    %162 = arith.mulf %157, %159 : vector<2x32xf32>
    %163 = arith.addf %161, %162 : vector<2x32xf32>
    %164 = math.tanh %163 : vector<2x32xf32>
    %165 = arith.mulf %160, %164 : vector<2x32xf32>
    %166 = arith.truncf %165 : vector<2x32xf32> to vector<2x32xbf16>
    %167 = tpu.concatenate %40, %58, %76, %94, %112, %130, %148, %166 in 0 : vector<2x32xbf16>, vector<2x32xbf16>, vector<2x32xbf16>, vector<2x32xbf16>, vector<2x32xbf16>, vector<2x32xbf16>, vector<2x32xbf16>, vector<2x32xbf16> -> vector<16x32xbf16>
    %c2_30 = arith.constant 2 : index
    %c0_31 = arith.constant 0 : index
    %c0_32 = arith.constant 0 : index
    %168 = vector.load %arg1[%c2_30, %c0_31, %c0_32] : memref<4x32x128xbf16, #tpu.memory_space<vmem>>, vector<1x32x128xbf16>
    %169 = vector.shape_cast %168 : vector<1x32x128xbf16> to vector<32x128xbf16>
    %c3 = arith.constant 3 : index
    %c0_33 = arith.constant 0 : index
    %c0_34 = arith.constant 0 : index
    %170 = vector.load %arg1[%c3, %c0_33, %c0_34] : memref<4x32x128xbf16, #tpu.memory_space<vmem>>, vector<1x32x128xbf16>
    %171 = vector.shape_cast %170 : vector<1x32x128xbf16> to vector<32x128xbf16>
    %cst_35 = arith.constant dense<0.000000e+00> : vector<16x128xf32>
    %172 = tpu.matmul %167, %169, %cst_35 {dimension_numbers = #tpu.dot_dimension_numbers<[1], [0], [0], [1], [0, 0, 1, 1], [], []>} : vector<16x32xbf16>, vector<32x128xbf16>, vector<16x128xf32> -> vector<16x128xf32>
    %c1_36 = arith.constant 1 : index
    %c0_37 = arith.constant 0 : index
    %c0_38 = arith.constant 0 : index
    %173 = vector.load %arg2[%c1_36, %c0_37, %c0_38] : memref<3x1x128xf32, #tpu.memory_space<vmem>>, vector<1x1x128xf32>
    %174 = vector.shape_cast %173 : vector<1x1x128xf32> to vector<1x128xf32>
    %175 = vector.broadcast %174 : vector<1x128xf32> to vector<16x128xf32>
    %176 = arith.addf %172, %175 : vector<16x128xf32>
    %177 = vector.extract_strided_slice %176 {offsets = [0, 0], sizes = [2, 128], strides = [1, 1]} : vector<16x128xf32> to vector<2x128xf32>
    %178 = vector.extract_strided_slice %176 {offsets = [2, 0], sizes = [2, 128], strides = [1, 1]} : vector<16x128xf32> to vector<2x128xf32>
    %179 = vector.extract_strided_slice %176 {offsets = [4, 0], sizes = [2, 128], strides = [1, 1]} : vector<16x128xf32> to vector<2x128xf32>
    %180 = vector.extract_strided_slice %176 {offsets = [6, 0], sizes = [2, 128], strides = [1, 1]} : vector<16x128xf32> to vector<2x128xf32>
    %181 = vector.extract_strided_slice %176 {offsets = [8, 0], sizes = [2, 128], strides = [1, 1]} : vector<16x128xf32> to vector<2x128xf32>
    %182 = vector.extract_strided_slice %176 {offsets = [10, 0], sizes = [2, 128], strides = [1, 1]} : vector<16x128xf32> to vector<2x128xf32>
    %183 = vector.extract_strided_slice %176 {offsets = [12, 0], sizes = [2, 128], strides = [1, 1]} : vector<16x128xf32> to vector<2x128xf32>
    %184 = vector.extract_strided_slice %176 {offsets = [14, 0], sizes = [2, 128], strides = [1, 1]} : vector<16x128xf32> to vector<2x128xf32>
    %c1_39 = arith.constant 1 : index
    %c0_40 = arith.constant 0 : index
    %c0_41 = arith.constant 0 : index
    %185 = vector.load %arg3[%c1_39, %c0_40, %c0_41] : memref<4x2x32xf32, #tpu.memory_space<vmem>>, vector<1x2x32xf32>
    %186 = vector.shape_cast %185 : vector<1x2x32xf32> to vector<2x32xf32>
    %187 = arith.truncf %186 : vector<2x32xf32> to vector<2x32xbf16>
    %c3_42 = arith.constant 3 : index
    %c0_43 = arith.constant 0 : index
    %c0_44 = arith.constant 0 : index
    %188 = vector.load %arg3[%c3_42, %c0_43, %c0_44] : memref<4x2x32xf32, #tpu.memory_space<vmem>>, vector<1x2x32xf32>
    %189 = vector.shape_cast %188 : vector<1x2x32xf32> to vector<2x32xf32>
    %cst_45 = arith.constant dense<0.000000e+00> : vector<2x128xf32>
    %190 = tpu.matmul %187, %171, %cst_45 {dimension_numbers = #tpu.dot_dimension_numbers<[1], [0], [0], [1], [0, 0, 1, 1], [], []>} : vector<2x32xbf16>, vector<32x128xbf16>, vector<2x128xf32> -> vector<2x128xf32>
    %191 = arith.addf %177, %190 : vector<2x128xf32>
    %192 = arith.negf %191 : vector<2x128xf32>
    %193 = math.exp %192 : vector<2x128xf32>
    %cst_46 = arith.constant 1.000000e+00 : f32
    %194 = vector.broadcast %cst_46 : f32 to vector<2x128xf32>
    %195 = arith.addf %194, %193 : vector<2x128xf32>
    %196 = arith.divf %194, %195 : vector<2x128xf32>
    %197 = math.tanh %191 : vector<2x128xf32>
    %198 = vector.extract_strided_slice %196 {offsets = [0, 0], sizes = [2, 32], strides = [1, 1]} : vector<2x128xf32> to vector<2x32xf32>
    %199 = vector.extract_strided_slice %196 {offsets = [0, 32], sizes = [2, 32], strides = [1, 1]} : vector<2x128xf32> to vector<2x32xf32>
    %200 = vector.extract_strided_slice %197 {offsets = [0, 64], sizes = [2, 32], strides = [1, 1]} : vector<2x128xf32> to vector<2x32xf32>
    %201 = vector.extract_strided_slice %196 {offsets = [0, 96], sizes = [2, 32], strides = [1, 1]} : vector<2x128xf32> to vector<2x32xf32>
    %202 = arith.mulf %199, %189 : vector<2x32xf32>
    %203 = arith.mulf %198, %200 : vector<2x32xf32>
    %204 = arith.addf %202, %203 : vector<2x32xf32>
    %205 = math.tanh %204 : vector<2x32xf32>
    %206 = arith.mulf %201, %205 : vector<2x32xf32>
    %207 = arith.truncf %206 : vector<2x32xf32> to vector<2x32xbf16>
    %cst_47 = arith.constant dense<0.000000e+00> : vector<2x128xf32>
    %208 = tpu.matmul %207, %171, %cst_47 {dimension_numbers = #tpu.dot_dimension_numbers<[1], [0], [0], [1], [0, 0, 1, 1], [], []>} : vector<2x32xbf16>, vector<32x128xbf16>, vector<2x128xf32> -> vector<2x128xf32>
    %209 = arith.addf %178, %208 : vector<2x128xf32>
    %210 = arith.negf %209 : vector<2x128xf32>
    %211 = math.exp %210 : vector<2x128xf32>
    %cst_48 = arith.constant 1.000000e+00 : f32
    %212 = vector.broadcast %cst_48 : f32 to vector<2x128xf32>
    %213 = arith.addf %212, %211 : vector<2x128xf32>
    %214 = arith.divf %212, %213 : vector<2x128xf32>
    %215 = math.tanh %209 : vector<2x128xf32>
    %216 = vector.extract_strided_slice %214 {offsets = [0, 0], sizes = [2, 32], strides = [1, 1]} : vector<2x128xf32> to vector<2x32xf32>
    %217 = vector.extract_strided_slice %214 {offsets = [0, 32], sizes = [2, 32], strides = [1, 1]} : vector<2x128xf32> to vector<2x32xf32>
    %218 = vector.extract_strided_slice %215 {offsets = [0, 64], sizes = [2, 32], strides = [1, 1]} : vector<2x128xf32> to vector<2x32xf32>
    %219 = vector.extract_strided_slice %214 {offsets = [0, 96], sizes = [2, 32], strides = [1, 1]} : vector<2x128xf32> to vector<2x32xf32>
    %220 = arith.mulf %217, %204 : vector<2x32xf32>
    %221 = arith.mulf %216, %218 : vector<2x32xf32>
    %222 = arith.addf %220, %221 : vector<2x32xf32>
    %223 = math.tanh %222 : vector<2x32xf32>
    %224 = arith.mulf %219, %223 : vector<2x32xf32>
    %225 = arith.truncf %224 : vector<2x32xf32> to vector<2x32xbf16>
    %cst_49 = arith.constant dense<0.000000e+00> : vector<2x128xf32>
    %226 = tpu.matmul %225, %171, %cst_49 {dimension_numbers = #tpu.dot_dimension_numbers<[1], [0], [0], [1], [0, 0, 1, 1], [], []>} : vector<2x32xbf16>, vector<32x128xbf16>, vector<2x128xf32> -> vector<2x128xf32>
    %227 = arith.addf %179, %226 : vector<2x128xf32>
    %228 = arith.negf %227 : vector<2x128xf32>
    %229 = math.exp %228 : vector<2x128xf32>
    %cst_50 = arith.constant 1.000000e+00 : f32
    %230 = vector.broadcast %cst_50 : f32 to vector<2x128xf32>
    %231 = arith.addf %230, %229 : vector<2x128xf32>
    %232 = arith.divf %230, %231 : vector<2x128xf32>
    %233 = math.tanh %227 : vector<2x128xf32>
    %234 = vector.extract_strided_slice %232 {offsets = [0, 0], sizes = [2, 32], strides = [1, 1]} : vector<2x128xf32> to vector<2x32xf32>
    %235 = vector.extract_strided_slice %232 {offsets = [0, 32], sizes = [2, 32], strides = [1, 1]} : vector<2x128xf32> to vector<2x32xf32>
    %236 = vector.extract_strided_slice %233 {offsets = [0, 64], sizes = [2, 32], strides = [1, 1]} : vector<2x128xf32> to vector<2x32xf32>
    %237 = vector.extract_strided_slice %232 {offsets = [0, 96], sizes = [2, 32], strides = [1, 1]} : vector<2x128xf32> to vector<2x32xf32>
    %238 = arith.mulf %235, %222 : vector<2x32xf32>
    %239 = arith.mulf %234, %236 : vector<2x32xf32>
    %240 = arith.addf %238, %239 : vector<2x32xf32>
    %241 = math.tanh %240 : vector<2x32xf32>
    %242 = arith.mulf %237, %241 : vector<2x32xf32>
    %243 = arith.truncf %242 : vector<2x32xf32> to vector<2x32xbf16>
    %cst_51 = arith.constant dense<0.000000e+00> : vector<2x128xf32>
    %244 = tpu.matmul %243, %171, %cst_51 {dimension_numbers = #tpu.dot_dimension_numbers<[1], [0], [0], [1], [0, 0, 1, 1], [], []>} : vector<2x32xbf16>, vector<32x128xbf16>, vector<2x128xf32> -> vector<2x128xf32>
    %245 = arith.addf %180, %244 : vector<2x128xf32>
    %246 = arith.negf %245 : vector<2x128xf32>
    %247 = math.exp %246 : vector<2x128xf32>
    %cst_52 = arith.constant 1.000000e+00 : f32
    %248 = vector.broadcast %cst_52 : f32 to vector<2x128xf32>
    %249 = arith.addf %248, %247 : vector<2x128xf32>
    %250 = arith.divf %248, %249 : vector<2x128xf32>
    %251 = math.tanh %245 : vector<2x128xf32>
    %252 = vector.extract_strided_slice %250 {offsets = [0, 0], sizes = [2, 32], strides = [1, 1]} : vector<2x128xf32> to vector<2x32xf32>
    %253 = vector.extract_strided_slice %250 {offsets = [0, 32], sizes = [2, 32], strides = [1, 1]} : vector<2x128xf32> to vector<2x32xf32>
    %254 = vector.extract_strided_slice %251 {offsets = [0, 64], sizes = [2, 32], strides = [1, 1]} : vector<2x128xf32> to vector<2x32xf32>
    %255 = vector.extract_strided_slice %250 {offsets = [0, 96], sizes = [2, 32], strides = [1, 1]} : vector<2x128xf32> to vector<2x32xf32>
    %256 = arith.mulf %253, %240 : vector<2x32xf32>
    %257 = arith.mulf %252, %254 : vector<2x32xf32>
    %258 = arith.addf %256, %257 : vector<2x32xf32>
    %259 = math.tanh %258 : vector<2x32xf32>
    %260 = arith.mulf %255, %259 : vector<2x32xf32>
    %261 = arith.truncf %260 : vector<2x32xf32> to vector<2x32xbf16>
    %cst_53 = arith.constant dense<0.000000e+00> : vector<2x128xf32>
    %262 = tpu.matmul %261, %171, %cst_53 {dimension_numbers = #tpu.dot_dimension_numbers<[1], [0], [0], [1], [0, 0, 1, 1], [], []>} : vector<2x32xbf16>, vector<32x128xbf16>, vector<2x128xf32> -> vector<2x128xf32>
    %263 = arith.addf %181, %262 : vector<2x128xf32>
    %264 = arith.negf %263 : vector<2x128xf32>
    %265 = math.exp %264 : vector<2x128xf32>
    %cst_54 = arith.constant 1.000000e+00 : f32
    %266 = vector.broadcast %cst_54 : f32 to vector<2x128xf32>
    %267 = arith.addf %266, %265 : vector<2x128xf32>
    %268 = arith.divf %266, %267 : vector<2x128xf32>
    %269 = math.tanh %263 : vector<2x128xf32>
    %270 = vector.extract_strided_slice %268 {offsets = [0, 0], sizes = [2, 32], strides = [1, 1]} : vector<2x128xf32> to vector<2x32xf32>
    %271 = vector.extract_strided_slice %268 {offsets = [0, 32], sizes = [2, 32], strides = [1, 1]} : vector<2x128xf32> to vector<2x32xf32>
    %272 = vector.extract_strided_slice %269 {offsets = [0, 64], sizes = [2, 32], strides = [1, 1]} : vector<2x128xf32> to vector<2x32xf32>
    %273 = vector.extract_strided_slice %268 {offsets = [0, 96], sizes = [2, 32], strides = [1, 1]} : vector<2x128xf32> to vector<2x32xf32>
    %274 = arith.mulf %271, %258 : vector<2x32xf32>
    %275 = arith.mulf %270, %272 : vector<2x32xf32>
    %276 = arith.addf %274, %275 : vector<2x32xf32>
    %277 = math.tanh %276 : vector<2x32xf32>
    %278 = arith.mulf %273, %277 : vector<2x32xf32>
    %279 = arith.truncf %278 : vector<2x32xf32> to vector<2x32xbf16>
    %cst_55 = arith.constant dense<0.000000e+00> : vector<2x128xf32>
    %280 = tpu.matmul %279, %171, %cst_55 {dimension_numbers = #tpu.dot_dimension_numbers<[1], [0], [0], [1], [0, 0, 1, 1], [], []>} : vector<2x32xbf16>, vector<32x128xbf16>, vector<2x128xf32> -> vector<2x128xf32>
    %281 = arith.addf %182, %280 : vector<2x128xf32>
    %282 = arith.negf %281 : vector<2x128xf32>
    %283 = math.exp %282 : vector<2x128xf32>
    %cst_56 = arith.constant 1.000000e+00 : f32
    %284 = vector.broadcast %cst_56 : f32 to vector<2x128xf32>
    %285 = arith.addf %284, %283 : vector<2x128xf32>
    %286 = arith.divf %284, %285 : vector<2x128xf32>
    %287 = math.tanh %281 : vector<2x128xf32>
    %288 = vector.extract_strided_slice %286 {offsets = [0, 0], sizes = [2, 32], strides = [1, 1]} : vector<2x128xf32> to vector<2x32xf32>
    %289 = vector.extract_strided_slice %286 {offsets = [0, 32], sizes = [2, 32], strides = [1, 1]} : vector<2x128xf32> to vector<2x32xf32>
    %290 = vector.extract_strided_slice %287 {offsets = [0, 64], sizes = [2, 32], strides = [1, 1]} : vector<2x128xf32> to vector<2x32xf32>
    %291 = vector.extract_strided_slice %286 {offsets = [0, 96], sizes = [2, 32], strides = [1, 1]} : vector<2x128xf32> to vector<2x32xf32>
    %292 = arith.mulf %289, %276 : vector<2x32xf32>
    %293 = arith.mulf %288, %290 : vector<2x32xf32>
    %294 = arith.addf %292, %293 : vector<2x32xf32>
    %295 = math.tanh %294 : vector<2x32xf32>
    %296 = arith.mulf %291, %295 : vector<2x32xf32>
    %297 = arith.truncf %296 : vector<2x32xf32> to vector<2x32xbf16>
    %cst_57 = arith.constant dense<0.000000e+00> : vector<2x128xf32>
    %298 = tpu.matmul %297, %171, %cst_57 {dimension_numbers = #tpu.dot_dimension_numbers<[1], [0], [0], [1], [0, 0, 1, 1], [], []>} : vector<2x32xbf16>, vector<32x128xbf16>, vector<2x128xf32> -> vector<2x128xf32>
    %299 = arith.addf %183, %298 : vector<2x128xf32>
    %300 = arith.negf %299 : vector<2x128xf32>
    %301 = math.exp %300 : vector<2x128xf32>
    %cst_58 = arith.constant 1.000000e+00 : f32
    %302 = vector.broadcast %cst_58 : f32 to vector<2x128xf32>
    %303 = arith.addf %302, %301 : vector<2x128xf32>
    %304 = arith.divf %302, %303 : vector<2x128xf32>
    %305 = math.tanh %299 : vector<2x128xf32>
    %306 = vector.extract_strided_slice %304 {offsets = [0, 0], sizes = [2, 32], strides = [1, 1]} : vector<2x128xf32> to vector<2x32xf32>
    %307 = vector.extract_strided_slice %304 {offsets = [0, 32], sizes = [2, 32], strides = [1, 1]} : vector<2x128xf32> to vector<2x32xf32>
    %308 = vector.extract_strided_slice %305 {offsets = [0, 64], sizes = [2, 32], strides = [1, 1]} : vector<2x128xf32> to vector<2x32xf32>
    %309 = vector.extract_strided_slice %304 {offsets = [0, 96], sizes = [2, 32], strides = [1, 1]} : vector<2x128xf32> to vector<2x32xf32>
    %310 = arith.mulf %307, %294 : vector<2x32xf32>
    %311 = arith.mulf %306, %308 : vector<2x32xf32>
    %312 = arith.addf %310, %311 : vector<2x32xf32>
    %313 = math.tanh %312 : vector<2x32xf32>
    %314 = arith.mulf %309, %313 : vector<2x32xf32>
    %315 = arith.truncf %314 : vector<2x32xf32> to vector<2x32xbf16>
    %cst_59 = arith.constant dense<0.000000e+00> : vector<2x128xf32>
    %316 = tpu.matmul %315, %171, %cst_59 {dimension_numbers = #tpu.dot_dimension_numbers<[1], [0], [0], [1], [0, 0, 1, 1], [], []>} : vector<2x32xbf16>, vector<32x128xbf16>, vector<2x128xf32> -> vector<2x128xf32>
    %317 = arith.addf %184, %316 : vector<2x128xf32>
    %318 = arith.negf %317 : vector<2x128xf32>
    %319 = math.exp %318 : vector<2x128xf32>
    %cst_60 = arith.constant 1.000000e+00 : f32
    %320 = vector.broadcast %cst_60 : f32 to vector<2x128xf32>
    %321 = arith.addf %320, %319 : vector<2x128xf32>
    %322 = arith.divf %320, %321 : vector<2x128xf32>
    %323 = math.tanh %317 : vector<2x128xf32>
    %324 = vector.extract_strided_slice %322 {offsets = [0, 0], sizes = [2, 32], strides = [1, 1]} : vector<2x128xf32> to vector<2x32xf32>
    %325 = vector.extract_strided_slice %322 {offsets = [0, 32], sizes = [2, 32], strides = [1, 1]} : vector<2x128xf32> to vector<2x32xf32>
    %326 = vector.extract_strided_slice %323 {offsets = [0, 64], sizes = [2, 32], strides = [1, 1]} : vector<2x128xf32> to vector<2x32xf32>
    %327 = vector.extract_strided_slice %322 {offsets = [0, 96], sizes = [2, 32], strides = [1, 1]} : vector<2x128xf32> to vector<2x32xf32>
    %328 = arith.mulf %325, %312 : vector<2x32xf32>
    %329 = arith.mulf %324, %326 : vector<2x32xf32>
    %330 = arith.addf %328, %329 : vector<2x32xf32>
    %331 = math.tanh %330 : vector<2x32xf32>
    %332 = arith.mulf %327, %331 : vector<2x32xf32>
    %333 = arith.truncf %332 : vector<2x32xf32> to vector<2x32xbf16>
    %c0_61 = arith.constant 0 : index
    %c0_62 = arith.constant 0 : index
    %334 = vector.load %arg4[%c0_61, %c0_62] : memref<32x128xbf16, #tpu.memory_space<vmem>>, vector<32x128xbf16>
    %cst_63 = arith.constant dense<0.000000e+00> : vector<2x128xf32>
    %335 = tpu.matmul %333, %334, %cst_63 {dimension_numbers = #tpu.dot_dimension_numbers<[1], [0], [0], [1], [0, 0, 1, 1], [], []>} : vector<2x32xbf16>, vector<32x128xbf16>, vector<2x128xf32> -> vector<2x128xf32>
    %c2_64 = arith.constant 2 : index
    %c0_65 = arith.constant 0 : index
    %c0_66 = arith.constant 0 : index
    %336 = vector.load %arg2[%c2_64, %c0_65, %c0_66] : memref<3x1x128xf32, #tpu.memory_space<vmem>>, vector<1x1x128xf32>
    %337 = vector.shape_cast %336 : vector<1x1x128xf32> to vector<1x128xf32>
    %338 = vector.broadcast %337 : vector<1x128xf32> to vector<2x128xf32>
    %339 = arith.addf %335, %338 : vector<2x128xf32>
    %c0_67 = arith.constant 0 : index
    %c0_68 = arith.constant 0 : index
    %340 = vector.load %arg5[%c0_67, %c0_68] : memref<2x128xf32, #tpu.memory_space<vmem>>, vector<2x128xf32>
    tpu.vector_store %arg5[%c0_67, %c0_68], %339 {strides = array<i32>} : memref<2x128xf32, #tpu.memory_space<vmem>>, vector<2x128xf32>,
    return
  }
}

</mosaic_0001>

<bundles_post_ra>
// kernel: lstm_model_forward.1
= control target key start
LH: loop header
LB: loop body
LE: loop exit
PB: predicated region body
PF: predicated region fallthrough
CT: control target
= control target key end

     0   :  { %10 = vsyncpa [#allocation3], 0  ;;  %s1764_s0 = inlined_call_operand.vmem [shape: bf16[16,32], index: 0, kind: input, shape index: {}]   ;;  %s1765_s1 = inlined_call_operand.hbm [shape: bf16[4,32,128], index: 1, kind: input, shape index: {}]   ;;  %s1766_s2 = inlined_call_operand.vmem [shape: f32[3,1,128], index: 2, kind: input, shape index: {}]   ;;  %s1767_s3 = inlined_call_operand.vmem [shape: f32[4,2,32], index: 3, kind: input, shape index: {}]   ;;  %s1768_s4 = inlined_call_operand.vmem [shape: bf16[32,128], index: 4, kind: input, shape index: {}]   ;;  %s1769_s5 = inlined_call_operand.hbm [shape: f32[2,128], index: 5, kind: output, shape index: {}]  }
   0x1   :  { %11 = vsyncpa [#allocation4], 0  ;;  %s18_s20 = sshll.u32 %s1765_s1, 4  ;;  %s1567_s21 = smov [#allocation2]   ;;  %s19_s20 = int_to_ptr.hbm [resolvable:$true] %s18_s20 }
   0x2   :  { %s20_s22 = sshll.u32 %s1567_s21, 4  ;;  %s1568_s23 = smov 64   ;;  %s21_s22 = int_to_ptr.vmem [resolvable:$true] %s20_s22 }
   0x3   :  { %s1569_s24 = smov 4  }
   0x4   :  { %26 = dma.hbm_to_vmem [thread:$0]  %s19_s20, 1024, %s21_s22, [#allocation3], %s1568_s23, %s1568_s23, %s1569_s24  }
   0x5   :  { %1563 = dma.done.wait [#allocation3], 1024  }
   0x6   :  { %1564 = vsyncadd [#allocation3], 4294966272  ;;  %v1370_v0 = vld [vmem:[#allocation2 + $0x8] sm:$0xff]  ;;  %v1372_v1 = vld [vmem:[#allocation2 + $0x18] sm:$0xff]  ;;  %vm70_vm0 = vcmask 261120   ;;  %s1570_s6 = smov 32  }
   0x7   :  { %v1369_v2 = vld [vmem:[#allocation2] sm:$0xff]  ;;  %v1371_v3 = vld [vmem:[#allocation2 + $0x10] sm:$0xff]  ;;  %80 = vmatpush.bf16.msra.mxu0 %v1370_v0  ;;  %113 = vmatpush.bf16.msra.mxu1 %v1372_v1  ;;  %vm630_vm13 = vcmask 1040384   ;;  %vm634_vm14 = vcmask 1041408   ;;  %s1571_s18 = smov [#allocation5]  }
   0x8   :  { %v88_v4 = vld [vmem:[%s1767_s3] sm:$0x3]  ;;  %177 = vmatpush.bf16.msra.mxu2 %v1372_v1  ;;  %244 = vmatpush.bf16.msra.mxu3 %v1372_v1  ;;  %v1297_v14 = vld [vmem:[%s1767_s3 + $0x4] sm:$0x3]  ;;  %s1272_s19 = sshll.u32 %s1571_s18, 4  ;;  %s1273_s19 = int_to_ptr.vmem [resolvable:$true] %s1272_s19 }
   0x9   :  { %v1368_v5 = vld [vmem:[%s1764_s0] sm:$0xff]  ;;  %v89_v6 = vpack.c.bf16 %v88_v4, %v88_v4 }
   0xa   :  { %v1618_v7 = vld [vmem:[%s1766_s2] ss:$0 sm:$0xff] }
   0xb   :  { %81 = vmatpush.bf16.msra.mxu0 %v1369_v2  ;;  %114 = vmatpush.bf16.msra.mxu1 %v1371_v3 }
   0xc   :  { %178 = vmatpush.bf16.msra.mxu2 %v1371_v3  ;;  %245 = vmatpush.bf16.msra.mxu3 %v1371_v3 }
   0xe   :  { %1296 = vmatmul.msk.bf16.vlgmr.msra.gmra.mxu0 %vm70_vm0, %v1368_v5  ;;  %1306 = vmatmul.msk.bf16.vlgmr.msra.gmra.mxu1 %vm70_vm0, %v89_v6 }
   0xf   :  { %311 = vmatpush.bf16.msrb.mxu0 %v1372_v1  ;;  %378 = vmatpush.bf16.msrb.mxu1 %v1372_v1 }
  0x10   :  { %441 = vmatpush.bf16.msrb.mxu2 %v1372_v1  ;;  %508 = vmatpush.bf16.msrb.mxu3 %v1372_v1 }
  0x13   :  { %312 = vmatpush.bf16.msrb.mxu0 %v1371_v3  ;;  %379 = vmatpush.bf16.msrb.mxu1 %v1371_v3 }
  0x14   :  { %442 = vmatpush.bf16.msrb.mxu2 %v1371_v3  ;;  %509 = vmatpush.bf16.msrb.mxu3 %v1371_v3 }
  0x17   :  { %575 = vmatpush.bf16.msra.mxu0 %v1372_v1 }
  0x1b   :  { %576 = vmatpush.bf16.msra.mxu0 %v1371_v3 }
  0x8b   :  { %v83_v8 = vpop.f32.mrf.mxu0  ;;  %v116_v9 = vpop.f32.mrf.mxu1 }
  0x8c   :  { %v1621_v10 = vadd.f32 %v1618_v7, %v83_v8 }
  0x8e   :  { %v120_v11 = vadd.f32 %v116_v9, %v1621_v10 }
  0x90   :  { %1387 = vtanh.f32 %v120_v11  ;;  %v1307_v15 = vmul.f32 -1.442695, %v120_v11 }
  0x92   :  { %1389 = vpow2.f32 %v1307_v15 }
  0x93   :  { %v118_v12 = vpop.f32.mrf.mxu1 }
  0x96   :  { %v1388_v13 = vpop.eup %1387 }
  0x97   :  { %147 = vrot.lane.b32.xlu0 %v1388_v13, %s1568_s23 }
  0x98   :  { %v1390_v16 = vpop.eup %1389 }
  0x99   :  { %v124_v17 = vadd.f32 1.0, %v1390_v16 }
  0x9b   :  { %1391 = vrcp.f32 %v124_v17  ;;  %v136_v23 = vand.u32 2147483648, %v124_v17  ;;  %vm130_vm2 = vweird.f32 %v124_v17  ;;  %v134_v24 = vand.u32 2147483647, %v124_v17 }
  0x9d   :  { %v137_v26 = vor.u32 1.1754944e-38, %v136_v23  ;;  %vm135_vm4 = vcmp.eq.f32.partialorder %v134_v24, 8.507059e+37 }
  0x9f   :  { %142 = vrot.lane.b32.xlu0 %v1297_v14, %s1570_s6 }
  0xa1   :  { %v1392_v18 = vpop.eup %1391 }
  0xa2   :  { %v126_v19 = vmul.f32 %v1392_v18, %v124_v17  ;;  %vm131_vm1 = vweird.f32 %v1392_v18 }
  0xa3   :  { %vm132_vm3 = vmor %vm130_vm2, %vm131_vm1 }
  0xa4   :  { %v127_v20 = vsub.f32 1.0, %v126_v19 }
  0xa6   :  { %v128_v21 = vmul.f32 %v1392_v18, %v127_v20 }
  0xa8   :  { %v129_v22 = vadd.f32 %v1392_v18, %v128_v21 }
  0xaa   :  { %v133_v25 = vsel %vm132_vm3, %v1392_v18, %v129_v22 }
  0xab   :  { %v138_v28 = vsel %vm135_vm4, %v137_v26, %v133_v25  ;;  %vm637_vm4 = vcmask 1042432  }
 0x109   :  { %v148_v27 = vpop.permute.xlu0 %147 }
 0x10a   :  { %v150_v29 = vmul.f32 %v148_v27, %v138_v28 }
 0x10c   :  { %152 = vrot.lane.b32.xlu1 %v150_v29, %s1570_s6 }
 0x111   :  { %v143_v30 = vpop.permute.xlu0 %142 }
 0x112   :  { %v145_v31 = vmul.f32 %v143_v30, %v138_v28 }
 0x17e   :  { %v153_v32 = vpop.permute.xlu1 %152 }
 0x17f   :  { %v155_v33 = vadd.f32 %v153_v32, %v145_v31 }
 0x181   :  { %1393 = vtanh.f32 %v155_v33  ;;  %v209_v61 = vrot.slane %v155_v33, 6 }
 0x187   :  { %v1394_v34 = vpop.eup %1393 }
 0x188   :  { %158 = vrot.lane.b32.xlu1 %v1394_v34, %s1568_s23 }
 0x1fa   :  { %v159_v35 = vpop.permute.xlu1 %158 }
 0x1fb   :  { %v161_v36 = vmul.f32 %v159_v35, %v138_v28 }
 0x1fd   :  { %v1631_v37 = vpack.c.bf16 %v161_v36, %v161_v36 }
 0x1ff   :  { %v164_v38 = vunpack.c.l.b16 %v1631_v37 }
 0x201   :  { %v165_v39 = vpack.c.b16 %v164_v38, %v164_v38 }
 0x203   :  { %166 = vrot.lane.b32.xlu2 %v165_v39, %s1570_s6 }
 0x25d   :  { %v167_v40 = vpop.permute.xlu2 %166 }
 0x25e   :  { %1308 = vmatmul.msk.bf16.vlgmr.msra.gmra.mxu2 %vm70_vm0, %v167_v40 }
 0x2e1   :  { %v180_v41 = vpop.f32.mrf.mxu2 }
 0x2e2   :  { %v185_v42 = vrot.slane %v180_v41, 6 }
 0x2e4   :  { %v187_v43 = vadd.f32 %v185_v42, %v1621_v10 }
 0x2e6   :  { %1395 = vtanh.f32 %v187_v43  ;;  %v1309_v46 = vmul.f32 -1.442695, %v187_v43 }
 0x2e8   :  { %1397 = vpow2.f32 %v1309_v46  ;;  %v85_v46 = vpop.f32.mrf.mxu0 }
 0x2e9   :  { %v182_v44 = vpop.f32.mrf.mxu2 }
 0x2ec   :  { %v1396_v45 = vpop.eup %1395 }
 0x2ed   :  { %213 = vrot.lane.b32.xlu2 %v1396_v45, %s1568_s23 }
 0x2ee   :  { %v1398_v47 = vpop.eup %1397 }
 0x2ef   :  { %v191_v48 = vadd.f32 1.0, %v1398_v47 }
 0x2f1   :  { %1399 = vrcp.f32 %v191_v48  ;;  %v203_v54 = vand.u32 2147483648, %v191_v48  ;;  %vm197_vm6 = vweird.f32 %v191_v48  ;;  %v201_v55 = vand.u32 2147483647, %v191_v48 }
 0x2f3   :  { %v204_v57 = vor.u32 1.1754944e-38, %v203_v54  ;;  %vm202_vm8 = vcmp.eq.f32.partialorder %v201_v55, 8.507059e+37 }
 0x2f7   :  { %v1400_v49 = vpop.eup %1399 }
 0x2f8   :  { %v193_v50 = vmul.f32 %v1400_v49, %v191_v48  ;;  %vm198_vm5 = vweird.f32 %v1400_v49 }
 0x2f9   :  { %vm199_vm7 = vmor %vm197_vm6, %vm198_vm5 }
 0x2fa   :  { %v194_v51 = vsub.f32 1.0, %v193_v50 }
 0x2fc   :  { %v195_v52 = vmul.f32 %v1400_v49, %v194_v51 }
 0x2fe   :  { %v196_v53 = vadd.f32 %v1400_v49, %v195_v52 }
 0x300   :  { %v200_v56 = vsel %vm199_vm7, %v1400_v49, %v196_v53 }
 0x301   :  { %v205_v59 = vsel %vm202_vm8, %v204_v57, %v200_v56 }
 0x302   :  { %v211_v62 = vmul.f32 %v209_v61, %v205_v59 }
 0x347   :  { %v214_v58 = vpop.permute.xlu2 %213 }
 0x348   :  { %v216_v60 = vmul.f32 %v214_v58, %v205_v59 }
 0x34a   :  { %218 = vrot.lane.b32.xlu0 %v216_v60, %s1570_s6 }
 0x3bc   :  { %v219_v63 = vpop.permute.xlu0 %218 }
 0x3bd   :  { %v221_v0 = vadd.f32 %v219_v63, %v211_v62 }
 0x3bf   :  { %1401 = vtanh.f32 %v221_v0  ;;  %v276_v31 = vrot.slane %v221_v0, 6 }
 0x3c5   :  { %v1402_v1 = vpop.eup %1401 }
 0x3c6   :  { %224 = vrot.lane.b32.xlu1 %v1402_v1, %s1568_s23 }
 0x438   :  { %v225_v2 = vpop.permute.xlu1 %224 }
 0x439   :  { %v227_v3 = vmul.f32 %v225_v2, %v205_v59 }
 0x43b   :  { %v228_v4 = vpack.c.bf16 %v227_v3, %v227_v3 }
 0x43d   :  { %v230_v5 = vunpack.c.l.b16 %v228_v4  ;;  %v633_v40 = vsel %vm630_vm13, %v1631_v37, %v228_v4 }
 0x43f   :  { %v231_v6 = vpack.c.b16 %v230_v5, %v230_v5 }
 0x441   :  { %v232_v8 = vrot.slane %v231_v6, 1 }
 0x443   :  { %233 = vrot.lane.b32.xlu2 %v232_v8, %s1570_s6 }
 0x49d   :  { %v234_v9 = vpop.permute.xlu2 %233 }
 0x49e   :  { %1310 = vmatmul.msk.bf16.vlgmr.msra.gmra.mxu3 %vm70_vm0, %v234_v9 }
 0x521   :  { %v247_v11 = vpop.f32.mrf.mxu3 }
 0x522   :  { %v252_v12 = vrot.slane %v247_v11, 4 }
 0x524   :  { %v254_v13 = vadd.f32 %v252_v12, %v1621_v10 }
 0x526   :  { %1403 = vtanh.f32 %v254_v13  ;;  %v1311_v16 = vmul.f32 -1.442695, %v254_v13 }
 0x528   :  { %1405 = vpow2.f32 %v1311_v16  ;;  %v1656_v16 = vadd.f32 %v1618_v7, %v85_v46 }
 0x529   :  { %v249_v14 = vpop.f32.mrf.mxu3 }
 0x52c   :  { %v1404_v15 = vpop.eup %1403 }
 0x52d   :  { %280 = vrot.lane.b32.xlu0 %v1404_v15, %s1568_s23 }
 0x52e   :  { %v1406_v17 = vpop.eup %1405 }
 0x52f   :  { %v258_v18 = vadd.f32 1.0, %v1406_v17 }
 0x531   :  { %1407 = vrcp.f32 %v258_v18  ;;  %v270_v24 = vand.u32 2147483648, %v258_v18  ;;  %vm264_vm10 = vweird.f32 %v258_v18  ;;  %v268_v25 = vand.u32 2147483647, %v258_v18 }
 0x533   :  { %v271_v27 = vor.u32 1.1754944e-38, %v270_v24  ;;  %vm269_vm12 = vcmp.eq.f32.partialorder %v268_v25, 8.507059e+37 }
 0x537   :  { %v1408_v19 = vpop.eup %1407 }
 0x538   :  { %v260_v20 = vmul.f32 %v1408_v19, %v258_v18  ;;  %vm265_vm9 = vweird.f32 %v1408_v19 }
 0x539   :  { %vm266_vm11 = vmor %vm264_vm10, %vm265_vm9  ;;  %vm640_vm9 = vcmask 1043456  }
 0x53a   :  { %v261_v21 = vsub.f32 1.0, %v260_v20 }
 0x53c   :  { %v262_v22 = vmul.f32 %v1408_v19, %v261_v21 }
 0x53e   :  { %v263_v23 = vadd.f32 %v1408_v19, %v262_v22 }
 0x540   :  { %v267_v26 = vsel %vm266_vm11, %v1408_v19, %v263_v23 }
 0x541   :  { %v272_v29 = vsel %vm269_vm12, %v271_v27, %v267_v26 }
 0x542   :  { %v278_v32 = vmul.f32 %v276_v31, %v272_v29 }
 0x59f   :  { %v281_v28 = vpop.permute.xlu0 %280 }
 0x5a0   :  { %v283_v30 = vmul.f32 %v281_v28, %v272_v29 }
 0x5a2   :  { %285 = vrot.lane.b32.xlu1 %v283_v30, %s1570_s6 }
 0x614   :  { %v286_v33 = vpop.permute.xlu1 %285 }
 0x615   :  { %v288_v34 = vadd.f32 %v286_v33, %v278_v32 }
 0x617   :  { %1409 = vtanh.f32 %v288_v34  ;;  %v343_v1 = vrot.slane %v288_v34, 6 }
 0x61d   :  { %v1410_v35 = vpop.eup %1409 }
 0x61e   :  { %291 = vrot.lane.b32.xlu2 %v1410_v35, %s1568_s23 }
 0x678   :  { %v292_v36 = vpop.permute.xlu2 %291 }
 0x679   :  { %v294_v38 = vmul.f32 %v292_v36, %v272_v29 }
 0x67b   :  { %v295_v39 = vpack.c.bf16 %v294_v38, %v294_v38 }
 0x67d   :  { %v297_v41 = vunpack.c.l.b16 %v295_v39  ;;  %v636_v42 = vsel %vm634_vm14, %v633_v40, %v295_v39  ;;  %vm643_vm14 = vcmask 1044480  }
 0x67f   :  { %v298_v43 = vpack.c.b16 %v297_v41, %v297_v41 }
 0x681   :  { %v299_v44 = vrot.slane %v298_v43, 2 }
 0x683   :  { %300 = vrot.lane.b32.xlu0 %v299_v44, %s1570_s6 }
 0x6f5   :  { %v301_v45 = vpop.permute.xlu0 %300 }
 0x6f6   :  { %1312 = vmatmul.msk.bf16.vlgmr.msrb.gmra.mxu0 %vm70_vm0, %v301_v45 }
 0x773   :  { %v314_v47 = vpop.f32.mrf.mxu0 }
 0x774   :  { %v319_v48 = vrot.slane %v314_v47, 2 }
 0x776   :  { %v321_v49 = vadd.f32 %v319_v48, %v1621_v10 }
 0x778   :  { %1411 = vtanh.f32 %v321_v49  ;;  %v1313_v37 = vmul.f32 -1.442695, %v321_v49 }
 0x77a   :  { %1413 = vpow2.f32 %v1313_v37 }
 0x77b   :  { %v316_v50 = vpop.f32.mrf.mxu0 }
 0x77e   :  { %v1412_v51 = vpop.eup %1411 }
 0x77f   :  { %347 = vrot.lane.b32.xlu1 %v1412_v51, %s1568_s23 }
 0x780   :  { %v1414_v52 = vpop.eup %1413 }
 0x781   :  { %v325_v53 = vadd.f32 1.0, %v1414_v52 }
 0x783   :  { %1415 = vrcp.f32 %v325_v53  ;;  %v337_v59 = vand.u32 2147483648, %v325_v53  ;;  %vm331_vm1 = vweird.f32 %v325_v53  ;;  %v335_v60 = vand.u32 2147483647, %v325_v53 }
 0x785   :  { %v338_v61 = vor.u32 1.1754944e-38, %v337_v59  ;;  %vm336_vm3 = vcmp.eq.f32.partialorder %v335_v60, 8.507059e+37 }
 0x789   :  { %v1416_v54 = vpop.eup %1415 }
 0x78a   :  { %v327_v55 = vmul.f32 %v1416_v54, %v325_v53  ;;  %vm332_vm15 = vweird.f32 %v1416_v54 }
 0x78b   :  { %vm333_vm2 = vmor %vm331_vm1, %vm332_vm15 }
 0x78c   :  { %v328_v56 = vsub.f32 1.0, %v327_v55 }
 0x78e   :  { %v329_v57 = vmul.f32 %v1416_v54, %v328_v56 }
 0x790   :  { %v330_v58 = vadd.f32 %v1416_v54, %v329_v57 }
 0x792   :  { %v334_v10 = vsel %vm333_vm2, %v1416_v54, %v330_v58 }
 0x793   :  { %v339_v63 = vsel %vm336_vm3, %v338_v61, %v334_v10 }
 0x794   :  { %v345_v2 = vmul.f32 %v343_v1, %v339_v63 }
 0x7f1   :  { %v348_v62 = vpop.permute.xlu1 %347 }
 0x7f2   :  { %v350_v0 = vmul.f32 %v348_v62, %v339_v63 }
 0x7f4   :  { %352 = vrot.lane.b32.xlu2 %v350_v0, %s1570_s6 }
 0x84e   :  { %v353_v3 = vpop.permute.xlu2 %352 }
 0x84f   :  { %v355_v4 = vadd.f32 %v353_v3, %v345_v2 }
 0x851   :  { %1417 = vtanh.f32 %v355_v4  ;;  %v407_v35 = vrot.slane %v355_v4, 6 }
 0x857   :  { %v1418_v5 = vpop.eup %1417 }
 0x858   :  { %358 = vrot.lane.b32.xlu0 %v1418_v5, %s1568_s23 }
 0x8ca   :  { %v359_v6 = vpop.permute.xlu0 %358 }
 0x8cb   :  { %v361_v8 = vmul.f32 %v359_v6, %v339_v63 }
 0x8cd   :  { %v362_v9 = vpack.c.bf16 %v361_v8, %v361_v8 }
 0x8cf   :  { %v364_v11 = vunpack.c.l.b16 %v362_v9  ;;  %v639_v12 = vsel %vm637_vm4, %v636_v42, %v362_v9  ;;  %vm646_vm4 = vcmask 1045504  }
 0x8d1   :  { %v365_v13 = vpack.c.b16 %v364_v11, %v364_v11 }
 0x8d3   :  { %v366_v14 = vrot.slane %v365_v13, 3 }
 0x8d5   :  { %367 = vrot.lane.b32.xlu1 %v366_v14, %s1570_s6 }
 0x947   :  { %v368_v15 = vpop.permute.xlu1 %367 }
 0x948   :  { %1314 = vmatmul.msk.bf16.vlgmr.msrb.gmra.mxu1 %vm70_vm0, %v368_v15 }
 0x9c5   :  { %v381_v17 = vpop.f32.mrf.mxu1 }
 0x9c6   :  { %v385_v18 = vadd.f32 %v381_v17, %v1656_v16 }
 0x9c8   :  { %1419 = vtanh.f32 %v385_v18  ;;  %v1315_v21 = vmul.f32 -1.442695, %v385_v18 }
 0x9ca   :  { %1421 = vpow2.f32 %v1315_v21 }
 0x9cd   :  { %v383_v19 = vpop.f32.mrf.mxu1 }
 0x9ce   :  { %v1420_v20 = vpop.eup %1419 }
 0x9cf   :  { %411 = vrot.lane.b32.xlu2 %v1420_v20, %s1568_s23 }
 0x9d0   :  { %v1422_v22 = vpop.eup %1421 }
 0x9d1   :  { %v389_v23 = vadd.f32 1.0, %v1422_v22 }
 0x9d3   :  { %1423 = vrcp.f32 %v389_v23  ;;  %v401_v7 = vand.u32 2147483648, %v389_v23  ;;  %vm395_vm6 = vweird.f32 %v389_v23  ;;  %v399_v29 = vand.u32 2147483647, %v389_v23 }
 0x9d5   :  { %v402_v31 = vor.u32 1.1754944e-38, %v401_v7  ;;  %vm400_vm8 = vcmp.eq.f32.partialorder %v399_v29, 8.507059e+37 }
 0x9d9   :  { %v1424_v24 = vpop.eup %1423 }
 0x9da   :  { %v391_v25 = vmul.f32 %v1424_v24, %v389_v23  ;;  %vm396_vm5 = vweird.f32 %v1424_v24 }
 0x9db   :  { %vm397_vm7 = vmor %vm395_vm6, %vm396_vm5 }
 0x9dc   :  { %v392_v26 = vsub.f32 1.0, %v391_v25 }
 0x9de   :  { %v393_v27 = vmul.f32 %v1424_v24, %v392_v26 }
 0x9e0   :  { %v394_v28 = vadd.f32 %v1424_v24, %v393_v27 }
 0x9e2   :  { %v398_v30 = vsel %vm397_vm7, %v1424_v24, %v394_v28 }
 0x9e3   :  { %v403_v33 = vsel %vm400_vm8, %v402_v31, %v398_v30 }
 0x9e4   :  { %v409_v36 = vmul.f32 %v407_v35, %v403_v33 }
 0xa29   :  { %v412_v32 = vpop.permute.xlu2 %411 }
 0xa2a   :  { %v414_v34 = vmul.f32 %v412_v32, %v403_v33 }
 0xa2c   :  { %416 = vrot.lane.b32.xlu0 %v414_v34, %s1570_s6 }
 0xa9e   :  { %v417_v38 = vpop.permute.xlu0 %416 }
 0xa9f   :  { %v419_v39 = vadd.f32 %v417_v38, %v409_v36 }
 0xaa1   :  { %1425 = vtanh.f32 %v419_v39  ;;  %v473_v2 = vrot.slane %v419_v39, 6 }
 0xaa7   :  { %v1426_v40 = vpop.eup %1425 }
 0xaa8   :  { %422 = vrot.lane.b32.xlu1 %v1426_v40, %s1568_s23 }
 0xb1a   :  { %v423_v41 = vpop.permute.xlu1 %422 }
 0xb1b   :  { %v425_v42 = vmul.f32 %v423_v41, %v403_v33 }
 0xb1d   :  { %v426_v43 = vpack.c.bf16 %v425_v42, %v425_v42 }
 0xb1f   :  { %v428_v44 = vunpack.c.l.b16 %v426_v43 }
 0xb21   :  { %v429_v45 = vpack.c.b16 %v428_v44, %v428_v44 }
 0xb23   :  { %v642_v46 = vsel %vm640_vm9, %v639_v12, %v429_v45  ;;  %430 = vrot.lane.b32.xlu2 %v429_v45, %s1570_s6  ;;  %vm649_vm9 = vcmask 1046528  }
 0xb7d   :  { %v431_v47 = vpop.permute.xlu2 %430 }
 0xb7e   :  { %1316 = vmatmul.msk.bf16.vlgmr.msrb.gmra.mxu2 %vm70_vm0, %v431_v47 }
 0xc01   :  { %v444_v48 = vpop.f32.mrf.mxu2 }
 0xc02   :  { %v449_v49 = vrot.slane %v444_v48, 6 }
 0xc04   :  { %v451_v50 = vadd.f32 %v449_v49, %v1656_v16 }
 0xc06   :  { %1427 = vtanh.f32 %v451_v50  ;;  %v1317_v52 = vmul.f32 -1.442695, %v451_v50 }
 0xc08   :  { %1429 = vpow2.f32 %v1317_v52 }
 0xc09   :  { %v446_v51 = vpop.f32.mrf.mxu2 }
 0xc0c   :  { %v1428_v37 = vpop.eup %1427 }
 0xc0d   :  { %477 = vrot.lane.b32.xlu0 %v1428_v37, %s1568_s23 }
 0xc0e   :  { %v1430_v53 = vpop.eup %1429 }
 0xc0f   :  { %v455_v54 = vadd.f32 1.0, %v1430_v53 }
 0xc11   :  { %1431 = vrcp.f32 %v455_v54  ;;  %v467_v60 = vand.u32 2147483648, %v455_v54  ;;  %vm461_vm11 = vweird.f32 %v455_v54  ;;  %v465_v10 = vand.u32 2147483647, %v455_v54 }
 0xc13   :  { %v468_v62 = vor.u32 1.1754944e-38, %v467_v60  ;;  %vm466_vm13 = vcmp.eq.f32.partialorder %v465_v10, 8.507059e+37 }
 0xc17   :  { %v1432_v55 = vpop.eup %1431 }
 0xc18   :  { %v457_v56 = vmul.f32 %v1432_v55, %v455_v54  ;;  %vm462_vm10 = vweird.f32 %v1432_v55 }
 0xc19   :  { %vm463_vm12 = vmor %vm461_vm11, %vm462_vm10 }
 0xc1a   :  { %v458_v57 = vsub.f32 1.0, %v457_v56 }
 0xc1c   :  { %v459_v58 = vmul.f32 %v1432_v55, %v458_v57 }
 0xc1e   :  { %v460_v59 = vadd.f32 %v1432_v55, %v459_v58 }
 0xc20   :  { %v464_v61 = vsel %vm463_vm12, %v1432_v55, %v460_v59 }
 0xc21   :  { %v469_v0 = vsel %vm466_vm13, %v468_v62, %v464_v61 }
 0xc22   :  { %v475_v3 = vmul.f32 %v473_v2, %v469_v0 }
 0xc7f   :  { %v478_v63 = vpop.permute.xlu0 %477 }
 0xc80   :  { %v480_v1 = vmul.f32 %v478_v63, %v469_v0 }
 0xc82   :  { %482 = vrot.lane.b32.xlu1 %v480_v1, %s1570_s6 }
 0xcf4   :  { %v483_v4 = vpop.permute.xlu1 %482 }
 0xcf5   :  { %v485_v5 = vadd.f32 %v483_v4, %v475_v3 }
 0xcf7   :  { %1433 = vtanh.f32 %v485_v5  ;;  %v540_v38 = vrot.slane %v485_v5, 6 }
 0xcfd   :  { %v1434_v6 = vpop.eup %1433 }
 0xcfe   :  { %488 = vrot.lane.b32.xlu2 %v1434_v6, %s1568_s23 }
 0xd58   :  { %v489_v8 = vpop.permute.xlu2 %488 }
 0xd59   :  { %v491_v9 = vmul.f32 %v489_v8, %v469_v0 }
 0xd5b   :  { %v492_v11 = vpack.c.bf16 %v491_v9, %v491_v9 }
 0xd5d   :  { %v494_v12 = vunpack.c.l.b16 %v492_v11  ;;  %v1376_v11 = vld [vmem:[#allocation2 + $0x38] sm:$0xff] }
 0xd5e   :  { %725 = vmatpush.bf16.msra.mxu2 %v1376_v11  ;;  %787 = vmatpush.bf16.msra.mxu3 %v1376_v11 }
 0xd5f   :  { %v495_v13 = vpack.c.b16 %v494_v12, %v494_v12  ;;  %v1374_v12 = vld [vmem:[#allocation2 + $0x28] sm:$0xff]  ;;  %852 = vmatpush.bf16.msrb.mxu0 %v1376_v11 }
 0xd60   :  { %691 = vmatpush.bf16.msra.mxu1 %v1374_v12 }
 0xd61   :  { %v496_v14 = vrot.slane %v495_v13, 1  ;;  %v645_v15 = vsel %vm643_vm14, %v642_v46, %v495_v13  ;;  %v1375_v13 = vld [vmem:[#allocation2 + $0x30] sm:$0xff] }
 0xd62   :  { %726 = vmatpush.bf16.msra.mxu2 %v1375_v13  ;;  %788 = vmatpush.bf16.msra.mxu3 %v1375_v13 }
 0xd63   :  { %497 = vrot.lane.b32.xlu0 %v496_v14, %s1570_s6  ;;  %v1332_v14 = vld [vmem:[%s1767_s3 + $0x2] sm:$0x3]  ;;  %853 = vmatpush.bf16.msrb.mxu0 %v1375_v13 }
 0xd66   :  { %982 = vmatpush.bf16.msrb.mxu2 %v1376_v11 }
 0xd6a   :  { %983 = vmatpush.bf16.msrb.mxu2 %v1375_v13 }
 0xdd5   :  { %v498_v17 = vpop.permute.xlu0 %497 }
 0xdd6   :  { %1318 = vmatmul.msk.bf16.vlgmr.msrb.gmra.mxu3 %vm70_vm0, %v498_v17  ;;  %v701_v17 = vpack.c.bf16 %v1332_v14, %v1332_v14 }
 0xdd7   :  { %1043 = vmatpush.bf16.msrb.mxu3 %v1376_v11 }
 0xdd8   :  { %1342 = vmatmul.msk.bf16.vlgmr.msra.gmra.mxu2 %vm70_vm0, %v701_v17 }
 0xddb   :  { %1044 = vmatpush.bf16.msrb.mxu3 %v1375_v13 }
 0xe59   :  { %v511_v18 = vpop.f32.mrf.mxu3 }
 0xe5a   :  { %v516_v19 = vrot.slane %v511_v18, 4 }
 0xe5c   :  { %v518_v20 = vadd.f32 %v516_v19, %v1656_v16 }
 0xe5e   :  { %1435 = vtanh.f32 %v518_v20  ;;  %v1319_v23 = vmul.f32 -1.442695, %v518_v20 }
 0xe60   :  { %1437 = vpow2.f32 %v1319_v23 }
 0xe61   :  { %v513_v21 = vpop.f32.mrf.mxu3 }
 0xe64   :  { %v1436_v22 = vpop.eup %1435 }
 0xe65   :  { %544 = vrot.lane.b32.xlu1 %v1436_v22, %s1568_s23 }
 0xe66   :  { %v1438_v24 = vpop.eup %1437 }
 0xe67   :  { %v522_v25 = vadd.f32 1.0, %v1438_v24  ;;  %v1333_v24 = vld [vmem:[%s1767_s3 + $0x6] sm:$0x3] }
 0xe69   :  { %1439 = vrcp.f32 %v522_v25  ;;  %v534_v30 = vand.u32 2147483648, %v522_v25  ;;  %vm528_vm1 = vweird.f32 %v522_v25  ;;  %v532_v31 = vand.u32 2147483647, %v522_v25 }
 0xe6b   :  { %v535_v33 = vor.u32 1.1754944e-38, %v534_v30  ;;  %vm533_vm3 = vcmp.eq.f32.partialorder %v532_v31, 8.507059e+37 }
 0xe6f   :  { %v1440_v26 = vpop.eup %1439 }
 0xe70   :  { %v524_v27 = vmul.f32 %v1440_v26, %v522_v25  ;;  %vm529_vm15 = vweird.f32 %v1440_v26 }
 0xe71   :  { %vm530_vm2 = vmor %vm528_vm1, %vm529_vm15 }
 0xe72   :  { %v525_v28 = vsub.f32 1.0, %v524_v27 }
 0xe74   :  { %v526_v7 = vmul.f32 %v1440_v26, %v525_v28  ;;  %v1696_v28 = vld [vmem:[%s1766_s2 + $0x1] ss:$0 sm:$0xff] }
 0xe76   :  { %v527_v29 = vadd.f32 %v1440_v26, %v526_v7 }
 0xe78   :  { %v531_v32 = vsel %vm530_vm2, %v1440_v26, %v527_v29  ;;  %v728_v26 = vpop.f32.mrf.mxu2 }
 0xe79   :  { %v536_v35 = vsel %vm533_vm3, %v535_v33, %v531_v32 }
 0xe7a   :  { %v542_v39 = vmul.f32 %v540_v38, %v536_v35 }
 0xe80   :  { %v730_v27 = vpop.f32.mrf.mxu2 }
 0xed7   :  { %v545_v34 = vpop.permute.xlu1 %544 }
 0xed8   :  { %v547_v36 = vmul.f32 %v545_v34, %v536_v35 }
 0xeda   :  { %549 = vrot.lane.b32.xlu2 %v547_v36, %s1570_s6 }
 0xf34   :  { %v550_v40 = vpop.permute.xlu2 %549 }
 0xf35   :  { %v552_v41 = vadd.f32 %v550_v40, %v542_v39 }
 0xf37   :  { %1441 = vtanh.f32 %v552_v41  ;;  %v607_v4 = vrot.slane %v552_v41, 6 }
 0xf3d   :  { %v1442_v42 = vpop.eup %1441 }
 0xf3e   :  { %555 = vrot.lane.b32.xlu0 %v1442_v42, %s1568_s23 }
 0xfb0   :  { %v556_v43 = vpop.permute.xlu0 %555 }
 0xfb1   :  { %v558_v44 = vmul.f32 %v556_v43, %v536_v35 }
 0xfb3   :  { %v559_v45 = vpack.c.bf16 %v558_v44, %v558_v44 }
 0xfb5   :  { %v561_v46 = vunpack.c.l.b16 %v559_v45 }
 0xfb7   :  { %v562_v47 = vpack.c.b16 %v561_v46, %v561_v46 }
 0xfb9   :  { %v563_v48 = vrot.slane %v562_v47, 2  ;;  %v1674_v49 = vsel %vm646_vm4, %v645_v15, %v562_v47  ;;  %v1373_v15 = vld [vmem:[#allocation2 + $0x20] sm:$0xff] }
 0xfba   :  { %692 = vmatpush.bf16.msra.mxu1 %v1373_v15 }
 0xfbb   :  { %564 = vrot.lane.b32.xlu1 %v563_v48, %s1570_s6 }
 0xfbe   :  { %917 = vmatpush.bf16.msrb.mxu1 %v1376_v11 }
 0xfc2   :  { %918 = vmatpush.bf16.msrb.mxu1 %v1375_v13 }
0x102d   :  { %v565_v50 = vpop.permute.xlu1 %564 }
0x102e   :  { %1320 = vmatmul.msk.bf16.vlgmr.msra.gmra.mxu0 %vm70_vm0, %v565_v50 }
0x102f   :  { %1108 = vmatpush.bf16.msra.mxu0 %v1376_v11 }
0x1033   :  { %1109 = vmatpush.bf16.msra.mxu0 %v1375_v13 }
0x10ab   :  { %v578_v51 = vpop.f32.mrf.mxu0 }
0x10ac   :  { %v583_v37 = vrot.slane %v578_v51, 2 }
0x10ae   :  { %v585_v52 = vadd.f32 %v583_v37, %v1656_v16 }
0x10b0   :  { %1443 = vtanh.f32 %v585_v52  ;;  %v1321_v55 = vmul.f32 -1.442695, %v585_v52 }
0x10b2   :  { %1445 = vpow2.f32 %v1321_v55 }
0x10b3   :  { %v580_v53 = vpop.f32.mrf.mxu0 }
0x10b6   :  { %v1444_v54 = vpop.eup %1443 }
0x10b7   :  { %611 = vrot.lane.b32.xlu2 %v1444_v54, %s1568_s23 }
0x10b8   :  { %v1446_v56 = vpop.eup %1445 }
0x10b9   :  { %v589_v57 = vadd.f32 1.0, %v1446_v56 }
0x10bb   :  { %1447 = vrcp.f32 %v589_v57  ;;  %v601_v62 = vand.u32 2147483648, %v589_v57  ;;  %vm595_vm6 = vweird.f32 %v589_v57  ;;  %v599_v63 = vand.u32 2147483647, %v589_v57 }
0x10bd   :  { %v602_v0 = vor.u32 1.1754944e-38, %v601_v62  ;;  %vm600_vm8 = vcmp.eq.f32.partialorder %v599_v63, 8.507059e+37 }
0x10c1   :  { %v1448_v58 = vpop.eup %1447 }
0x10c2   :  { %v591_v59 = vmul.f32 %v1448_v58, %v589_v57  ;;  %vm596_vm5 = vweird.f32 %v1448_v58 }
0x10c3   :  { %vm597_vm7 = vmor %vm595_vm6, %vm596_vm5 }
0x10c4   :  { %v592_v60 = vsub.f32 1.0, %v591_v59 }
0x10c6   :  { %v593_v10 = vmul.f32 %v1448_v58, %v592_v60 }
0x10c8   :  { %v594_v61 = vadd.f32 %v1448_v58, %v593_v10 }
0x10ca   :  { %v598_v16 = vsel %vm597_vm7, %v1448_v58, %v594_v61 }
0x10cb   :  { %v603_v2 = vsel %vm600_vm8, %v602_v0, %v598_v16 }
0x10cc   :  { %v609_v5 = vmul.f32 %v607_v4, %v603_v2 }
0x1111   :  { %v612_v1 = vpop.permute.xlu2 %611 }
0x1112   :  { %v614_v3 = vmul.f32 %v612_v1, %v603_v2 }
0x1114   :  { %616 = vrot.lane.b32.xlu0 %v614_v3, %s1570_s6 }
0x1186   :  { %v617_v6 = vpop.permute.xlu0 %616 }
0x1187   :  { %v619_v8 = vadd.f32 %v617_v6, %v609_v5 }
0x1189   :  { %1449 = vtanh.f32 %v619_v8 }
0x118f   :  { %v1450_v9 = vpop.eup %1449 }
0x1190   :  { %622 = vrot.lane.b32.xlu1 %v1450_v9, %s1568_s23 }
0x1198   :  { %754 = vrot.lane.b32.xlu1 %v1333_v24, %s1570_s6 }
0x1202   :  { %v623_v18 = vpop.permute.xlu1 %622 }
0x1203   :  { %v625_v19 = vmul.f32 %v623_v18, %v603_v2 }
0x1205   :  { %v626_v20 = vpack.c.bf16 %v625_v19, %v625_v19 }
0x1207   :  { %v628_v21 = vunpack.c.l.b16 %v626_v20 }
0x1209   :  { %v629_v22 = vpack.c.b16 %v628_v21, %v628_v21 }
0x120a   :  { %v755_v48 = vpop.permute.xlu1 %754 }
0x120b   :  { %v651_v23 = vsel %vm649_vm9, %v1674_v49, %v629_v22 }
0x120c   :  { %668 = vrot.lane.b32.xlu2 %v651_v23, %s1570_s6 }
0x1266   :  { %v669_v25 = vpop.permute.xlu2 %668 }
0x1267   :  { %1331 = vmatmul.msk.bf16.vlgmr.msra.gmra.mxu1 %vm70_vm0, %v669_v25 }
0x1268   :  { %1173 = vmatpush.bf16.msra.mxu1 %v1376_v11 }
0x126c   :  { %1174 = vmatpush.bf16.msra.mxu1 %v1375_v13 }
0x12e4   :  { %v694_v7 = vpop.f32.mrf.mxu1 }
0x12e5   :  { %v1699_v29 = vadd.f32 %v1696_v28, %v694_v7 }
0x12e7   :  { %v732_v30 = vadd.f32 %v728_v26, %v1699_v29 }
0x12e9   :  { %1451 = vtanh.f32 %v732_v30  ;;  %v1343_v32 = vmul.f32 -1.442695, %v732_v30 }
0x12eb   :  { %1453 = vpow2.f32 %v1343_v32 }
0x12ef   :  { %v1452_v31 = vpop.eup %1451 }
0x12f0   :  { %759 = vrot.lane.b32.xlu0 %v1452_v31, %s1568_s23 }
0x12f1   :  { %v1454_v33 = vpop.eup %1453 }
0x12f2   :  { %v736_v34 = vadd.f32 1.0, %v1454_v33 }
0x12f4   :  { %1455 = vrcp.f32 %v736_v34  ;;  %v748_v41 = vand.u32 2147483648, %v736_v34  ;;  %vm742_vm11 = vweird.f32 %v736_v34  ;;  %v746_v42 = vand.u32 2147483647, %v736_v34 }
0x12f6   :  { %v749_v44 = vor.u32 1.1754944e-38, %v748_v41  ;;  %vm747_vm13 = vcmp.eq.f32.partialorder %v746_v42, 8.507059e+37 }
0x12fa   :  { %v1456_v35 = vpop.eup %1455 }
0x12fb   :  { %v738_v36 = vmul.f32 %v1456_v35, %v736_v34  ;;  %vm743_vm10 = vweird.f32 %v1456_v35 }
0x12fc   :  { %vm744_vm12 = vmor %vm742_vm11, %vm743_vm10 }
0x12fd   :  { %v739_v38 = vsub.f32 1.0, %v738_v36 }
0x12ff   :  { %v740_v39 = vmul.f32 %v1456_v35, %v739_v38 }
0x1301   :  { %v741_v40 = vadd.f32 %v1456_v35, %v740_v39 }
0x1303   :  { %v745_v43 = vsel %vm744_vm12, %v1456_v35, %v741_v40 }
0x1304   :  { %v750_v45 = vsel %vm747_vm13, %v749_v44, %v745_v43 }
0x1305   :  { %v757_v49 = vmul.f32 %v755_v48, %v750_v45 }
0x1362   :  { %v760_v46 = vpop.permute.xlu0 %759 }
0x1363   :  { %v762_v47 = vmul.f32 %v760_v46, %v750_v45 }
0x1365   :  { %764 = vrot.lane.b32.xlu2 %v762_v47, %s1570_s6 }
0x13bf   :  { %v765_v50 = vpop.permute.xlu2 %764 }
0x13c0   :  { %v767_v51 = vadd.f32 %v765_v50, %v757_v49 }
0x13c2   :  { %1457 = vtanh.f32 %v767_v51  ;;  %v819_v12 = vrot.slane %v767_v51, 6 }
0x13c8   :  { %v1458_v37 = vpop.eup %1457 }
0x13c9   :  { %770 = vrot.lane.b32.xlu0 %v1458_v37, %s1568_s23 }
0x143b   :  { %v771_v52 = vpop.permute.xlu0 %770 }
0x143c   :  { %v773_v53 = vmul.f32 %v771_v52, %v750_v45 }
0x143e   :  { %v774_v54 = vpack.c.bf16 %v773_v53, %v773_v53 }
0x1440   :  { %776 = vrot.lane.b32.xlu1 %v774_v54, %s1570_s6  ;;  %v696_v54 = vpop.f32.mrf.mxu1 }
0x14b2   :  { %v777_v55 = vpop.permute.xlu1 %776 }
0x14b3   :  { %1344 = vmatmul.msk.bf16.vlgmr.msra.gmra.mxu3 %vm70_vm0, %v777_v55 }
0x1536   :  { %v790_v56 = vpop.f32.mrf.mxu3 }
0x1537   :  { %v795_v57 = vrot.slane %v790_v56, 6 }
0x1539   :  { %v797_v58 = vadd.f32 %v795_v57, %v1699_v29 }
0x153b   :  { %1459 = vtanh.f32 %v797_v58  ;;  %v1345_v10 = vmul.f32 -1.442695, %v797_v58 }
0x153d   :  { %1461 = vpow2.f32 %v1345_v10 }
0x153e   :  { %v792_v59 = vpop.f32.mrf.mxu3 }
0x1541   :  { %v1460_v60 = vpop.eup %1459 }
0x1542   :  { %823 = vrot.lane.b32.xlu2 %v1460_v60, %s1568_s23 }
0x1543   :  { %v1462_v61 = vpop.eup %1461 }
0x1544   :  { %v801_v62 = vadd.f32 1.0, %v1462_v61 }
0x1546   :  { %1463 = vrcp.f32 %v801_v62  ;;  %v813_v3 = vand.u32 2147483648, %v801_v62  ;;  %vm807_vm15 = vweird.f32 %v801_v62  ;;  %v811_v4 = vand.u32 2147483647, %v801_v62 }
0x1548   :  { %v814_v6 = vor.u32 1.1754944e-38, %v813_v3  ;;  %vm812_vm2 = vcmp.eq.f32.partialorder %v811_v4, 8.507059e+37 }
0x154c   :  { %v1464_v63 = vpop.eup %1463 }
0x154d   :  { %v803_v16 = vmul.f32 %v1464_v63, %v801_v62  ;;  %vm808_vm14 = vweird.f32 %v1464_v63 }
0x154e   :  { %vm809_vm1 = vmor %vm807_vm15, %vm808_vm14 }
0x154f   :  { %v804_v0 = vsub.f32 1.0, %v803_v16 }
0x1551   :  { %v805_v1 = vmul.f32 %v1464_v63, %v804_v0 }
0x1553   :  { %v806_v2 = vadd.f32 %v1464_v63, %v805_v1 }
0x1555   :  { %v810_v5 = vsel %vm809_vm1, %v1464_v63, %v806_v2 }
0x1556   :  { %v815_v9 = vsel %vm812_vm2, %v814_v6, %v810_v5 }
0x1557   :  { %v821_v13 = vmul.f32 %v819_v12, %v815_v9 }
0x159c   :  { %v824_v8 = vpop.permute.xlu2 %823 }
0x159d   :  { %v826_v11 = vmul.f32 %v824_v8, %v815_v9 }
0x159f   :  { %828 = vrot.lane.b32.xlu0 %v826_v11, %s1570_s6 }
0x1611   :  { %v829_v14 = vpop.permute.xlu0 %828 }
0x1612   :  { %v831_v15 = vadd.f32 %v829_v14, %v821_v13 }
0x1614   :  { %1465 = vtanh.f32 %v831_v15  ;;  %v884_v45 = vrot.slane %v831_v15, 6 }
0x161a   :  { %v1466_v17 = vpop.eup %1465 }
0x161b   :  { %834 = vrot.lane.b32.xlu1 %v1466_v17, %s1568_s23 }
0x168d   :  { %v835_v18 = vpop.permute.xlu1 %834 }
0x168e   :  { %v837_v19 = vmul.f32 %v835_v18, %v815_v9 }
0x1690   :  { %v838_v20 = vpack.c.bf16 %v837_v19, %v837_v19 }
0x1692   :  { %v840_v21 = vrot.slane %v838_v20, 1 }
0x1694   :  { %841 = vrot.lane.b32.xlu2 %v840_v21, %s1570_s6  ;;  %v1726_v21 = vadd.f32 %v1696_v28, %v696_v54 }
0x16ee   :  { %v842_v22 = vpop.permute.xlu2 %841 }
0x16ef   :  { %1346 = vmatmul.msk.bf16.vlgmr.msrb.gmra.mxu0 %vm70_vm0, %v842_v22 }
0x176c   :  { %v855_v23 = vpop.f32.mrf.mxu0 }
0x176d   :  { %v860_v24 = vrot.slane %v855_v23, 4 }
0x176f   :  { %v862_v25 = vadd.f32 %v860_v24, %v1699_v29 }
0x1771   :  { %1467 = vtanh.f32 %v862_v25  ;;  %v1347_v7 = vmul.f32 -1.442695, %v862_v25 }
0x1773   :  { %1469 = vpow2.f32 %v1347_v7 }
0x1774   :  { %v857_v26 = vpop.f32.mrf.mxu0 }
0x1777   :  { %v1468_v27 = vpop.eup %1467 }
0x1778   :  { %888 = vrot.lane.b32.xlu0 %v1468_v27, %s1568_s23 }
0x1779   :  { %v1470_v30 = vpop.eup %1469 }
0x177a   :  { %v866_v31 = vadd.f32 1.0, %v1470_v30 }
0x177c   :  { %1471 = vrcp.f32 %v866_v31  ;;  %v878_v38 = vand.u32 2147483648, %v866_v31  ;;  %vm872_vm4 = vweird.f32 %v866_v31  ;;  %v876_v39 = vand.u32 2147483647, %v866_v31 }
0x177e   :  { %v879_v41 = vor.u32 1.1754944e-38, %v878_v38  ;;  %vm877_vm6 = vcmp.eq.f32.partialorder %v876_v39, 8.507059e+37 }
0x1782   :  { %v1472_v32 = vpop.eup %1471 }
0x1783   :  { %v868_v33 = vmul.f32 %v1472_v32, %v866_v31  ;;  %vm873_vm3 = vweird.f32 %v1472_v32 }
0x1784   :  { %vm874_vm5 = vmor %vm872_vm4, %vm873_vm3 }
0x1785   :  { %v869_v34 = vsub.f32 1.0, %v868_v33 }
0x1787   :  { %v870_v35 = vmul.f32 %v1472_v32, %v869_v34 }
0x1789   :  { %v871_v36 = vadd.f32 %v1472_v32, %v870_v35 }
0x178b   :  { %v875_v40 = vsel %vm874_vm5, %v1472_v32, %v871_v36 }
0x178c   :  { %v880_v43 = vsel %vm877_vm6, %v879_v41, %v875_v40 }
0x178d   :  { %v886_v46 = vmul.f32 %v884_v45, %v880_v43 }
0x17ea   :  { %v889_v42 = vpop.permute.xlu0 %888 }
0x17eb   :  { %v891_v44 = vmul.f32 %v889_v42, %v880_v43 }
0x17ed   :  { %893 = vrot.lane.b32.xlu1 %v891_v44, %s1570_s6 }
0x185f   :  { %v894_v47 = vpop.permute.xlu1 %893 }
0x1860   :  { %v896_v48 = vadd.f32 %v894_v47, %v886_v46 }
0x1862   :  { %1473 = vtanh.f32 %v896_v48  ;;  %v949_v9 = vrot.slane %v896_v48, 6 }
0x1868   :  { %v1474_v49 = vpop.eup %1473 }
0x1869   :  { %899 = vrot.lane.b32.xlu2 %v1474_v49, %s1568_s23 }
0x18c3   :  { %v900_v50 = vpop.permute.xlu2 %899 }
0x18c4   :  { %v902_v51 = vmul.f32 %v900_v50, %v880_v43 }
0x18c6   :  { %v903_v37 = vpack.c.bf16 %v902_v51, %v902_v51 }
0x18c8   :  { %v905_v52 = vrot.slane %v903_v37, 2 }
0x18ca   :  { %906 = vrot.lane.b32.xlu0 %v905_v52, %s1570_s6 }
0x193c   :  { %v907_v53 = vpop.permute.xlu0 %906 }
0x193d   :  { %1348 = vmatmul.msk.bf16.vlgmr.msrb.gmra.mxu1 %vm70_vm0, %v907_v53 }
0x19ba   :  { %v920_v55 = vpop.f32.mrf.mxu1 }
0x19bb   :  { %v925_v56 = vrot.slane %v920_v55, 2 }
0x19bd   :  { %v927_v57 = vadd.f32 %v925_v56, %v1699_v29 }
0x19bf   :  { %1475 = vtanh.f32 %v927_v57  ;;  %v1349_v60 = vmul.f32 -1.442695, %v927_v57 }
0x19c1   :  { %1477 = vpow2.f32 %v1349_v60 }
0x19c2   :  { %v922_v58 = vpop.f32.mrf.mxu1 }
0x19c5   :  { %v1476_v59 = vpop.eup %1475 }
0x19c6   :  { %953 = vrot.lane.b32.xlu1 %v1476_v59, %s1568_s23 }
0x19c7   :  { %v1478_v10 = vpop.eup %1477 }
0x19c8   :  { %v931_v61 = vadd.f32 1.0, %v1478_v10 }
0x19ca   :  { %1479 = vrcp.f32 %v931_v61  ;;  %v943_v2 = vand.u32 2147483648, %v931_v61  ;;  %vm937_vm8 = vweird.f32 %v931_v61  ;;  %v941_v3 = vand.u32 2147483647, %v931_v61 }
0x19cc   :  { %v944_v4 = vor.u32 1.1754944e-38, %v943_v2  ;;  %vm942_vm10 = vcmp.eq.f32.partialorder %v941_v3, 8.507059e+37 }
0x19d0   :  { %v1480_v62 = vpop.eup %1479 }
0x19d1   :  { %v933_v63 = vmul.f32 %v1480_v62, %v931_v61  ;;  %vm938_vm7 = vweird.f32 %v1480_v62 }
0x19d2   :  { %vm939_vm9 = vmor %vm937_vm8, %vm938_vm7 }
0x19d3   :  { %v934_v16 = vsub.f32 1.0, %v933_v63 }
0x19d5   :  { %v935_v0 = vmul.f32 %v1480_v62, %v934_v16 }
0x19d7   :  { %v936_v1 = vadd.f32 %v1480_v62, %v935_v0 }
0x19d9   :  { %v940_v29 = vsel %vm939_vm9, %v1480_v62, %v936_v1 }
0x19da   :  { %v945_v6 = vsel %vm942_vm10, %v944_v4, %v940_v29 }
0x19db   :  { %v951_v11 = vmul.f32 %v949_v9, %v945_v6 }
0x1a38   :  { %v954_v5 = vpop.permute.xlu1 %953 }
0x1a39   :  { %v956_v8 = vmul.f32 %v954_v5, %v945_v6 }
0x1a3b   :  { %958 = vrot.lane.b32.xlu2 %v956_v8, %s1570_s6 }
0x1a95   :  { %v959_v12 = vpop.permute.xlu2 %958 }
0x1a96   :  { %v961_v13 = vadd.f32 %v959_v12, %v951_v11 }
0x1a98   :  { %1481 = vtanh.f32 %v961_v13  ;;  %v1011_v42 = vrot.slane %v961_v13, 6 }
0x1a9e   :  { %v1482_v14 = vpop.eup %1481 }
0x1a9f   :  { %964 = vrot.lane.b32.xlu0 %v1482_v14, %s1568_s23 }
0x1b11   :  { %v965_v15 = vpop.permute.xlu0 %964 }
0x1b12   :  { %v967_v17 = vmul.f32 %v965_v15, %v945_v6 }
0x1b14   :  { %v968_v18 = vpack.c.bf16 %v967_v17, %v967_v17 }
0x1b16   :  { %v970_v19 = vrot.slane %v968_v18, 3 }
0x1b18   :  { %971 = vrot.lane.b32.xlu1 %v970_v19, %s1570_s6 }
0x1b8a   :  { %v972_v20 = vpop.permute.xlu1 %971 }
0x1b8b   :  { %1350 = vmatmul.msk.bf16.vlgmr.msrb.gmra.mxu2 %vm70_vm0, %v972_v20 }
0x1c0e   :  { %v985_v22 = vpop.f32.mrf.mxu2 }
0x1c0f   :  { %v989_v23 = vadd.f32 %v985_v22, %v1726_v21 }
0x1c11   :  { %1483 = vtanh.f32 %v989_v23  ;;  %v1351_v26 = vmul.f32 -1.442695, %v989_v23 }
0x1c13   :  { %1485 = vpow2.f32 %v1351_v26 }
0x1c16   :  { %v987_v24 = vpop.f32.mrf.mxu2 }
0x1c17   :  { %v1484_v25 = vpop.eup %1483 }
0x1c18   :  { %1015 = vrot.lane.b32.xlu2 %v1484_v25, %s1568_s23 }
0x1c19   :  { %v1486_v27 = vpop.eup %1485 }
0x1c1a   :  { %v993_v7 = vadd.f32 1.0, %v1486_v27 }
0x1c1c   :  { %1487 = vrcp.f32 %v993_v7  ;;  %v1005_v28 = vand.u32 2147483648, %v993_v7  ;;  %vm999_vm12 = vweird.f32 %v993_v7  ;;  %v1003_v35 = vand.u32 2147483647, %v993_v7 }
0x1c1e   :  { %v1006_v38 = vor.u32 1.1754944e-38, %v1005_v28  ;;  %vm1004_vm14 = vcmp.eq.f32.partialorder %v1003_v35, 8.507059e+37 }
0x1c22   :  { %v1488_v30 = vpop.eup %1487 }
0x1c23   :  { %v995_v31 = vmul.f32 %v1488_v30, %v993_v7  ;;  %vm1000_vm11 = vweird.f32 %v1488_v30 }
0x1c24   :  { %vm1001_vm13 = vmor %vm999_vm12, %vm1000_vm11 }
0x1c25   :  { %v996_v32 = vsub.f32 1.0, %v995_v31 }
0x1c27   :  { %v997_v33 = vmul.f32 %v1488_v30, %v996_v32 }
0x1c29   :  { %v998_v34 = vadd.f32 %v1488_v30, %v997_v33 }
0x1c2b   :  { %v1002_v36 = vsel %vm1001_vm13, %v1488_v30, %v998_v34 }
0x1c2c   :  { %v1007_v40 = vsel %vm1004_vm14, %v1006_v38, %v1002_v36 }
0x1c2d   :  { %v1013_v43 = vmul.f32 %v1011_v42, %v1007_v40 }
0x1c72   :  { %v1016_v39 = vpop.permute.xlu2 %1015 }
0x1c73   :  { %v1018_v41 = vmul.f32 %v1016_v39, %v1007_v40 }
0x1c75   :  { %1020 = vrot.lane.b32.xlu0 %v1018_v41, %s1570_s6 }
0x1ce7   :  { %v1021_v44 = vpop.permute.xlu0 %1020 }
0x1ce8   :  { %v1023_v45 = vadd.f32 %v1021_v44, %v1013_v43 }
0x1cea   :  { %1489 = vtanh.f32 %v1023_v45  ;;  %v1075_v29 = vrot.slane %v1023_v45, 6 }
0x1cf0   :  { %v1490_v46 = vpop.eup %1489 }
0x1cf1   :  { %1026 = vrot.lane.b32.xlu1 %v1490_v46, %s1568_s23 }
0x1d63   :  { %v1027_v47 = vpop.permute.xlu1 %1026 }
0x1d64   :  { %v1029_v48 = vmul.f32 %v1027_v47, %v1007_v40 }
0x1d66   :  { %v1030_v49 = vpack.c.bf16 %v1029_v48, %v1029_v48 }
0x1d68   :  { %1032 = vrot.lane.b32.xlu2 %v1030_v49, %s1570_s6 }
0x1dc2   :  { %v1033_v50 = vpop.permute.xlu2 %1032 }
0x1dc3   :  { %1352 = vmatmul.msk.bf16.vlgmr.msrb.gmra.mxu3 %vm70_vm0, %v1033_v50 }
0x1e46   :  { %v1046_v51 = vpop.f32.mrf.mxu3 }
0x1e47   :  { %v1051_v37 = vrot.slane %v1046_v51, 6 }
0x1e49   :  { %v1053_v52 = vadd.f32 %v1051_v37, %v1726_v21 }
0x1e4b   :  { %1491 = vtanh.f32 %v1053_v52  ;;  %v1353_v55 = vmul.f32 -1.442695, %v1053_v52 }
0x1e4d   :  { %1493 = vpow2.f32 %v1353_v55 }
0x1e4e   :  { %v1048_v53 = vpop.f32.mrf.mxu3 }
0x1e51   :  { %v1492_v54 = vpop.eup %1491 }
0x1e52   :  { %1079 = vrot.lane.b32.xlu0 %v1492_v54, %s1568_s23 }
0x1e53   :  { %v1494_v56 = vpop.eup %1493 }
0x1e54   :  { %v1057_v57 = vadd.f32 1.0, %v1494_v56 }
0x1e56   :  { %1495 = vrcp.f32 %v1057_v57  ;;  %v1069_v62 = vand.u32 2147483648, %v1057_v57  ;;  %vm1063_vm1 = vweird.f32 %v1057_v57  ;;  %v1067_v63 = vand.u32 2147483647, %v1057_v57 }
0x1e58   :  { %v1070_v0 = vor.u32 1.1754944e-38, %v1069_v62  ;;  %vm1068_vm3 = vcmp.eq.f32.partialorder %v1067_v63, 8.507059e+37 }
0x1e5c   :  { %v1496_v58 = vpop.eup %1495 }
0x1e5d   :  { %v1059_v59 = vmul.f32 %v1496_v58, %v1057_v57  ;;  %vm1064_vm15 = vweird.f32 %v1496_v58 }
0x1e5e   :  { %vm1065_vm2 = vmor %vm1063_vm1, %vm1064_vm15 }
0x1e5f   :  { %v1060_v60 = vsub.f32 1.0, %v1059_v59 }
0x1e61   :  { %v1061_v10 = vmul.f32 %v1496_v58, %v1060_v60 }
0x1e63   :  { %v1062_v61 = vadd.f32 %v1496_v58, %v1061_v10 }
0x1e65   :  { %v1066_v16 = vsel %vm1065_vm2, %v1496_v58, %v1062_v61 }
0x1e66   :  { %v1071_v2 = vsel %vm1068_vm3, %v1070_v0, %v1066_v16 }
0x1e67   :  { %v1077_v4 = vmul.f32 %v1075_v29, %v1071_v2 }
0x1ec4   :  { %v1080_v1 = vpop.permute.xlu0 %1079 }
0x1ec5   :  { %v1082_v3 = vmul.f32 %v1080_v1, %v1071_v2 }
0x1ec7   :  { %1084 = vrot.lane.b32.xlu1 %v1082_v3, %s1570_s6 }
0x1f39   :  { %v1085_v5 = vpop.permute.xlu1 %1084 }
0x1f3a   :  { %v1087_v6 = vadd.f32 %v1085_v5, %v1077_v4  ;;  %v1378_v4 = vld [vmem:[%s1768_s4 + $0x8] sm:$0xff]  ;;  %v1377_v5 = vld [vmem:[%s1768_s4] sm:$0xff]  ;;  %s1274_s4 = sshll.u32 %s1769_s5, 4  ;;  %s1275_s4 = int_to_ptr.hbm [resolvable:$true] %s1274_s4 }
0x1f3b   :  { %1259 = vmatpush.bf16.msra.mxu2 %v1378_v4 }
0x1f3c   :  { %1497 = vtanh.f32 %v1087_v6  ;;  %v1140_v38 = vrot.slane %v1087_v6, 6 }
0x1f3f   :  { %1260 = vmatpush.bf16.msra.mxu2 %v1377_v5 }
0x1f42   :  { %v1498_v8 = vpop.eup %1497 }
0x1f43   :  { %1090 = vrot.lane.b32.xlu2 %v1498_v8, %s1568_s23 }
0x1f9d   :  { %v1091_v9 = vpop.permute.xlu2 %1090 }
0x1f9e   :  { %v1093_v11 = vmul.f32 %v1091_v9, %v1071_v2 }
0x1fa0   :  { %v1094_v12 = vpack.c.bf16 %v1093_v11, %v1093_v11 }
0x1fa2   :  { %v1096_v13 = vrot.slane %v1094_v12, 1 }
0x1fa4   :  { %1097 = vrot.lane.b32.xlu0 %v1096_v13, %s1570_s6  ;;  %v1386_v13 = vld [vmem:[%s1766_s2 + $0x2] ss:$0 sm:$0xff] }
0x2016   :  { %v1098_v14 = vpop.permute.xlu0 %1097 }
0x2017   :  { %1354 = vmatmul.msk.bf16.vlgmr.msra.gmra.mxu0 %vm70_vm0, %v1098_v14 }
0x2094   :  { %v1111_v15 = vpop.f32.mrf.mxu0 }
0x2095   :  { %v1116_v17 = vrot.slane %v1111_v15, 4 }
0x2097   :  { %v1118_v18 = vadd.f32 %v1116_v17, %v1726_v21 }
0x2099   :  { %1499 = vtanh.f32 %v1118_v18  ;;  %v1355_v22 = vmul.f32 -1.442695, %v1118_v18 }
0x209b   :  { %1501 = vpow2.f32 %v1355_v22 }
0x209c   :  { %v1113_v19 = vpop.f32.mrf.mxu0 }
0x209f   :  { %v1500_v20 = vpop.eup %1499 }
0x20a0   :  { %1144 = vrot.lane.b32.xlu1 %v1500_v20, %s1568_s23 }
0x20a1   :  { %v1502_v23 = vpop.eup %1501 }
0x20a2   :  { %v1122_v24 = vadd.f32 1.0, %v1502_v23 }
0x20a4   :  { %1503 = vrcp.f32 %v1122_v24  ;;  %v1134_v31 = vand.u32 2147483648, %v1122_v24  ;;  %vm1128_vm5 = vweird.f32 %v1122_v24  ;;  %v1132_v32 = vand.u32 2147483647, %v1122_v24 }
0x20a6   :  { %v1135_v34 = vor.u32 1.1754944e-38, %v1134_v31  ;;  %vm1133_vm7 = vcmp.eq.f32.partialorder %v1132_v32, 8.507059e+37 }
0x20aa   :  { %v1504_v25 = vpop.eup %1503 }
0x20ab   :  { %v1124_v26 = vmul.f32 %v1504_v25, %v1122_v24  ;;  %vm1129_vm4 = vweird.f32 %v1504_v25 }
0x20ac   :  { %vm1130_vm6 = vmor %vm1128_vm5, %vm1129_vm4 }
0x20ad   :  { %v1125_v27 = vsub.f32 1.0, %v1124_v26 }
0x20af   :  { %v1126_v7 = vmul.f32 %v1504_v25, %v1125_v27 }
0x20b1   :  { %v1127_v30 = vadd.f32 %v1504_v25, %v1126_v7 }
0x20b3   :  { %v1131_v33 = vsel %vm1130_vm6, %v1504_v25, %v1127_v30 }
0x20b4   :  { %v1136_v35 = vsel %vm1133_vm7, %v1135_v34, %v1131_v33 }
0x20b5   :  { %v1142_v39 = vmul.f32 %v1140_v38, %v1136_v35 }
0x2112   :  { %v1145_v28 = vpop.permute.xlu1 %1144 }
0x2113   :  { %v1147_v36 = vmul.f32 %v1145_v28, %v1136_v35 }
0x2115   :  { %1149 = vrot.lane.b32.xlu2 %v1147_v36, %s1570_s6 }
0x216f   :  { %v1150_v40 = vpop.permute.xlu2 %1149 }
0x2170   :  { %v1152_v41 = vadd.f32 %v1150_v40, %v1142_v39 }
0x2172   :  { %1505 = vtanh.f32 %v1152_v41  ;;  %v1205_v0 = vrot.slane %v1152_v41, 6 }
0x2178   :  { %v1506_v42 = vpop.eup %1505 }
0x2179   :  { %1155 = vrot.lane.b32.xlu0 %v1506_v42, %s1568_s23 }
0x21eb   :  { %v1156_v43 = vpop.permute.xlu0 %1155 }
0x21ec   :  { %v1158_v44 = vmul.f32 %v1156_v43, %v1136_v35 }
0x21ee   :  { %v1159_v45 = vpack.c.bf16 %v1158_v44, %v1158_v44 }
0x21f0   :  { %v1161_v46 = vrot.slane %v1159_v45, 2 }
0x21f2   :  { %1162 = vrot.lane.b32.xlu1 %v1161_v46, %s1570_s6 }
0x2264   :  { %v1163_v47 = vpop.permute.xlu1 %1162 }
0x2265   :  { %1356 = vmatmul.msk.bf16.vlgmr.msra.gmra.mxu1 %vm70_vm0, %v1163_v47 }
0x22e2   :  { %v1176_v48 = vpop.f32.mrf.mxu1 }
0x22e3   :  { %v1181_v49 = vrot.slane %v1176_v48, 2 }
0x22e5   :  { %v1183_v50 = vadd.f32 %v1181_v49, %v1726_v21 }
0x22e7   :  { %1507 = vtanh.f32 %v1183_v50  ;;  %v1357_v52 = vmul.f32 -1.442695, %v1183_v50 }
0x22e9   :  { %1509 = vpow2.f32 %v1357_v52 }
0x22ea   :  { %v1178_v51 = vpop.f32.mrf.mxu1 }
0x22ed   :  { %v1508_v37 = vpop.eup %1507 }
0x22ee   :  { %1209 = vrot.lane.b32.xlu2 %v1508_v37, %s1568_s23 }
0x22ef   :  { %v1510_v53 = vpop.eup %1509 }
0x22f0   :  { %v1187_v54 = vadd.f32 1.0, %v1510_v53 }
0x22f2   :  { %1511 = vrcp.f32 %v1187_v54  ;;  %v1199_v60 = vand.u32 2147483648, %v1187_v54  ;;  %vm1193_vm9 = vweird.f32 %v1187_v54  ;;  %v1197_v10 = vand.u32 2147483647, %v1187_v54 }
0x22f4   :  { %v1200_v61 = vor.u32 1.1754944e-38, %v1199_v60  ;;  %vm1198_vm11 = vcmp.eq.f32.partialorder %v1197_v10, 8.507059e+37 }
0x22f8   :  { %v1512_v55 = vpop.eup %1511 }
0x22f9   :  { %v1189_v56 = vmul.f32 %v1512_v55, %v1187_v54  ;;  %vm1194_vm8 = vweird.f32 %v1512_v55 }
0x22fa   :  { %vm1195_vm10 = vmor %vm1193_vm9, %vm1194_vm8 }
0x22fb   :  { %v1190_v57 = vsub.f32 1.0, %v1189_v56 }
0x22fd   :  { %v1191_v58 = vmul.f32 %v1512_v55, %v1190_v57 }
0x22ff   :  { %v1192_v59 = vadd.f32 %v1512_v55, %v1191_v58 }
0x2301   :  { %v1196_v21 = vsel %vm1195_vm10, %v1512_v55, %v1192_v59 }
0x2302   :  { %v1201_v63 = vsel %vm1198_vm11, %v1200_v61, %v1196_v21 }
0x2303   :  { %v1207_v1 = vmul.f32 %v1205_v0, %v1201_v63 }
0x2348   :  { %v1210_v62 = vpop.permute.xlu2 %1209 }
0x2349   :  { %v1212_v16 = vmul.f32 %v1210_v62, %v1201_v63 }
0x234b   :  { %1214 = vrot.lane.b32.xlu0 %v1212_v16, %s1570_s6 }
0x23bd   :  { %v1215_v2 = vpop.permute.xlu0 %1214 }
0x23be   :  { %v1217_v3 = vadd.f32 %v1215_v2, %v1207_v1 }
0x23c0   :  { %1513 = vtanh.f32 %v1217_v3 }
0x23c6   :  { %v1514_v29 = vpop.eup %1513 }
0x23c7   :  { %1220 = vrot.lane.b32.xlu1 %v1514_v29, %s1568_s23 }
0x2439   :  { %v1221_v6 = vpop.permute.xlu1 %1220 }
0x243a   :  { %v1223_v8 = vmul.f32 %v1221_v6, %v1201_v63 }
0x243c   :  { %v1224_v9 = vpack.c.bf16 %v1223_v8, %v1223_v8 }
0x243e   :  { %v1235_v11 = vrot.slane %v1224_v9, 3 }
0x2440   :  { %1236 = vrot.lane.b32.xlu2 %v1235_v11, %s1570_s6 }
0x249a   :  { %v1237_v12 = vpop.permute.xlu2 %1236 }
0x249b   :  { %1367 = vmatmul.msk.bf16.vlgmr.msra.gmra.mxu2 %vm70_vm0, %v1237_v12 }
0x251e   :  { %v1262_v14 = vpop.f32.mrf.mxu2 }
0x251f   :  { %v1263_v15 = vadd.f32 %v1386_v13, %v1262_v14 }
0x2521   :  { %1266 = vst [vmem:[#allocation5] sm:$0x3] %v1263_v15 }
0x2522   :  { %1277 = dma.vmem_to_hbm [thread:$0]  %s1273_s19, 32, %s1275_s4, [#allocation4]  }
0x2526   :  { %v1264_v17 = vpop.f32.mrf.mxu2 }
0x2527   :  { %1565 = dma.done.wait [#allocation4], 32  }
0x2528   :  { %1566 = vsyncadd [#allocation4], 4294967264 }
0x2529   :  { %1282 = vsyncpa [#allocation3], 1 }
0x252a   :  { %1283 = vsyncpa [#allocation4], 1 }

</bundles_post_ra>
